<compile_context>
chip_gen: v5e
topology: v5e:2x2
jax: 0.10.0
libtpu: 0.0.40
codegen_flags: <defaults>
</compile_context>

<pallas_src>
import jax
import jax.numpy as jnp
from jax import lax
from jax.experimental import pallas as pl
from jax.experimental.pallas import tpu as pltpu

INPUT_SIZE = 2
HIDDEN_SIZE = 128
FORECAST_HORIZON = 5  # output_size

_SUBLANE = 8    # f32 min sublane tile
_LANE = 128     # lane width


def gru_fc_kernel(x_ref, wih_t_ref, bias_ref, whh_t_ref, bhh_n_ref,
                  wfc_t_ref, bfc_ref, out_ref):
    # x_ref:     (T, Bp, I)  time-major, batch-padded raw input
    # wih_t_ref: (I, 3H)     input->gate weights (rows used as VPU broadcast operands)
    # bias_ref:  (1, 3H)     b_ih with b_hh[r,z] folded in
    # whh_t_ref: (H, 3H)     recurrent weights (resident in VMEM across all steps)
    # bhh_n_ref: (1, H)      b_hn (multiplied by r -> cannot be folded)
    # wfc_t_ref: (H, Op)     FC weight, lane-padded to 128 output columns
    # bfc_ref:   (1, Op)     FC bias, lane-padded
    # out_ref:   (Bp, Op)    lane-dense output block
    T, Bp, I = x_ref.shape
    H = whh_t_ref.shape[0]
    G = 3 * H

    # Hoisted broadcasts (JAX does not CSE broadcast_in_dim inside loops).
    wih_rows = [jnp.broadcast_to(wih_t_ref[i:i + 1, :], (Bp, G)) for i in range(I)]
    bias = jnp.broadcast_to(bias_ref[...], (Bp, G))
    bhh_n = jnp.broadcast_to(bhh_n_ref[...], (Bp, H))

    def input_proj(t):
        # VPU-only input projection: I broadcast-FMAs, no MXU involvement (K=I=2 is a
        # degenerate MXU shape; the VPU slots are otherwise idle here).
        xt = x_ref[t]                                   # (Bp, I)
        gi = bias
        for i in range(I):
            gi = gi + xt[:, i:i + 1] * wih_rows[i]
        return gi                                       # (Bp, 3H)

    # t == 0: h0 == 0  =>  gh == 0, so skip the first recurrent matmul entirely (exact).
    gi0 = input_proj(0)
    r0 = jax.nn.sigmoid(gi0[:, 0:H])
    z0 = jax.nn.sigmoid(gi0[:, H:2 * H])
    n0 = jnp.tanh(gi0[:, 2 * H:] + r0 * bhh_n)
    h1 = n0 - z0 * n0                                   # == (1 - z0) * n0 with h0 == 0

    def step(t, h):
        gi = input_proj(t)                              # VPU, overlaps the matmul below
        gh = jnp.dot(h, whh_t_ref[...],
                     preferred_element_type=jnp.float32)  # the only per-step MXU op
        # PyTorch gate order: r, z, n
        r = jax.nn.sigmoid(gi[:, 0:H] + gh[:, 0:H])
        z = jax.nn.sigmoid(gi[:, H:2 * H] + gh[:, H:2 * H])
        n = jnp.tanh(gi[:, 2 * H:] + r * (gh[:, 2 * H:] + bhh_n))
        return n + z * (h - n)                          # == (1-z)*n + z*h, one fewer mul

    h_last = lax.fori_loop(1, T, step, h1, unroll=True)

    out_ref[...] = (jnp.dot(h_last, wfc_t_ref[...],
                            preferred_element_type=jnp.float32)
                    + bfc_ref[...])


def gru_model_forward(x, params):
    """x: (B, T, I) float32 -> (B, output_size) float32 (matches PyTorch GRUModel.forward)."""
    B, T, I = x.shape
    H = HIDDEN_SIZE
    O = params["w_fc"].shape[0]
    Bp = max(_SUBLANE, ((B + _SUBLANE - 1) // _SUBLANE) * _SUBLANE)
    Op = max(_LANE, ((O + _LANE - 1) // _LANE) * _LANE)

    # Time-major, batch-padded raw input (~0.5 KB); projection happens in-kernel on the VPU.
    x_tm = jnp.pad(jnp.transpose(x.astype(jnp.float32), (1, 0, 2)),
                   ((0, 0), (0, Bp - B), (0, 0)))                      # (T, Bp, I)

    wih_t = params["w_ih"].T                                           # (I, 3H)
    whh_t = params["w_hh"].T                                           # (H, 3H)

    # Fold b_ih fully, plus b_hh's r/z slices (those gates sum gi+gh linearly), into one bias.
    bias_fold = params["b_ih"].at[:2 * H].add(params["b_hh"][:2 * H])[None, :]   # (1, 3H)
    bhh_n = params["b_hh"][2 * H:][None, :]                            # (1, H)

    # Lane-dense FC head: pad the 5 output columns to 128 with zeros; slice outside.
    wfc_t = jnp.pad(params["w_fc"].T, ((0, 0), (0, Op - O)))           # (H, Op)
    bfc = jnp.pad(params["b_fc"], (0, Op - O))[None, :]                # (1, Op)

    vmem = lambda: pl.BlockSpec(memory_space=pltpu.MemorySpace.VMEM)
    out_pad = pl.pallas_call(
        gru_fc_kernel,
        out_shape=jax.ShapeDtypeStruct((Bp, Op), jnp.float32),
        in_specs=[vmem() for _ in range(7)],
        out_specs=vmem(),
    )(x_tm, wih_t, bias_fold, whh_t, bhh_n, wfc_t, bfc)

    return out_pad[:B, :O]


def gru_model_reference(x, params):
    """Pure-JAX reference reproducing PyTorch nn.GRU + Linear semantics (f32 HIGHEST)."""
    B, T, I = x.shape
    H = HIDDEN_SIZE
    hi = jax.lax.Precision.HIGHEST
    wih_t, whh_t = params["w_ih"].T, params["w_hh"].T
    bih, bhh = params["b_ih"], params["b_hh"]
    h = jnp.zeros((B, H), jnp.float32)
    for t in range(T):
        gi = jnp.dot(x[:, t, :], wih_t, precision=hi) + bih
        gh = jnp.dot(h, whh_t, precision=hi) + bhh
        r = jax.nn.sigmoid(gi[:, :H] + gh[:, :H])
        z = jax.nn.sigmoid(gi[:, H:2 * H] + gh[:, H:2 * H])
        n = jnp.tanh(gi[:, 2 * H:] + r * gh[:, 2 * H:])
        h = (1.0 - z) * n + z * h
    return jnp.dot(h, params["w_fc"].T, precision=hi) + params["b_fc"]


def init_params(key):
    """Deterministic init matching PyTorch shapes (uniform(-1/sqrt(H), 1/sqrt(H)))."""
    H, I, O = HIDDEN_SIZE, INPUT_SIZE, FORECAST_HORIZON
    k = 1.0 / jnp.sqrt(jnp.float32(H))
    ks = jax.random.split(key, 6)
    u = lambda kk, shape, bound: jax.random.uniform(
        kk, shape, jnp.float32, minval=-bound, maxval=bound)
    return {
        "w_ih": u(ks[0], (3 * H, I), k),
        "w_hh": u(ks[1], (3 * H, H), k),
        "b_ih": u(ks[2], (3 * H,), k),
        "b_hh": u(ks[3], (3 * H,), k),
        "w_fc": u(ks[4], (O, H), k),
        "b_fc": u(ks[5], (O,), k),
    }


if __name__ == "__main__":
    key = jax.random.PRNGKey(0)
    k_x, k_p = jax.random.split(key)

    B, T = 2, 8
    x = jax.random.normal(k_x, (B, T, INPUT_SIZE), jnp.float32)
    params = init_params(k_p)

    out = jax.jit(gru_model_forward)(x, params)
    out = jax.block_until_ready(out)

    ref = gru_model_reference(x, params)
    assert out.shape == (B, FORECAST_HORIZON)
    assert jnp.allclose(out, ref, atol=1e-4, rtol=1e-4), (out, ref)

    print("KERNEL_OK")
</pallas_src>

<mosaic_0001>
module attributes {stable_mosaic.version = 11 : i64} {
  func.func @gru_fc_kernel(%arg0: memref<8x8x2xf32, #tpu.memory_space<vmem>>, %arg1: memref<2x384xf32, #tpu.memory_space<vmem>>, %arg2: memref<1x384xf32, #tpu.memory_space<vmem>>, %arg3: memref<128x384xf32, #tpu.memory_space<vmem>>, %arg4: memref<1x128xf32, #tpu.memory_space<vmem>>, %arg5: memref<128x128xf32, #tpu.memory_space<vmem>>, %arg6: memref<1x128xf32, #tpu.memory_space<vmem>>, %arg7: memref<8x128xf32, #tpu.memory_space<vmem>>) attributes {dimension_semantics = [], scalar_prefetch = 0 : i64, scratch_operands = 0 : i64, tpu.core_type = #tpu.core_type<tc>} {
    %c0 = arith.constant 0 : index
    %c0_0 = arith.constant 0 : index
    %0 = vector.load %arg1[%c0, %c0_0] : memref<2x384xf32, #tpu.memory_space<vmem>>, vector<1x384xf32>
    %1 = vector.shape_cast %0 : vector<1x384xf32> to vector<1x384xf32>
    %2 = vector.broadcast %1 : vector<1x384xf32> to vector<8x384xf32>
    %c1 = arith.constant 1 : index
    %c0_1 = arith.constant 0 : index
    %3 = vector.load %arg1[%c1, %c0_1] : memref<2x384xf32, #tpu.memory_space<vmem>>, vector<1x384xf32>
    %4 = vector.shape_cast %3 : vector<1x384xf32> to vector<1x384xf32>
    %5 = vector.broadcast %4 : vector<1x384xf32> to vector<8x384xf32>
    %c0_2 = arith.constant 0 : index
    %c0_3 = arith.constant 0 : index
    %6 = vector.load %arg2[%c0_2, %c0_3] : memref<1x384xf32, #tpu.memory_space<vmem>>, vector<1x384xf32>
    %7 = vector.shape_cast %6 : vector<1x384xf32> to vector<1x384xf32>
    %8 = vector.broadcast %7 : vector<1x384xf32> to vector<8x384xf32>
    %c0_4 = arith.constant 0 : index
    %c0_5 = arith.constant 0 : index
    %9 = vector.load %arg4[%c0_4, %c0_5] : memref<1x128xf32, #tpu.memory_space<vmem>>, vector<1x128xf32>
    %10 = vector.shape_cast %9 : vector<1x128xf32> to vector<1x128xf32>
    %11 = vector.broadcast %10 : vector<1x128xf32> to vector<8x128xf32>
    %c0_6 = arith.constant 0 : index
    %c0_7 = arith.constant 0 : index
    %c0_8 = arith.constant 0 : index
    %12 = vector.load %arg0[%c0_6, %c0_7, %c0_8] : memref<8x8x2xf32, #tpu.memory_space<vmem>>, vector<1x8x2xf32>
    %13 = vector.shape_cast %12 : vector<1x8x2xf32> to vector<8x2xf32>
    %14 = vector.extract_strided_slice %13 {offsets = [0, 0], sizes = [8, 1], strides = [1, 1]} : vector<8x2xf32> to vector<8x1xf32>
    %15 = vector.broadcast %14 : vector<8x1xf32> to vector<8x384xf32>
    %16 = arith.mulf %15, %2 : vector<8x384xf32>
    %17 = arith.addf %8, %16 : vector<8x384xf32>
    %18 = vector.extract_strided_slice %13 {offsets = [0, 1], sizes = [8, 1], strides = [1, 1]} : vector<8x2xf32> to vector<8x1xf32>
    %19 = vector.broadcast %18 : vector<8x1xf32> to vector<8x384xf32>
    %20 = arith.mulf %19, %5 : vector<8x384xf32>
    %21 = arith.addf %17, %20 : vector<8x384xf32>
    %22 = vector.extract_strided_slice %21 {offsets = [0, 0], sizes = [8, 128], strides = [1, 1]} : vector<8x384xf32> to vector<8x128xf32>
    %23 = arith.negf %22 : vector<8x128xf32>
    %24 = math.exp %23 : vector<8x128xf32>
    %cst = arith.constant 1.000000e+00 : f32
    %25 = vector.broadcast %cst : f32 to vector<8x128xf32>
    %26 = arith.addf %25, %24 : vector<8x128xf32>
    %27 = arith.divf %25, %26 : vector<8x128xf32>
    %28 = vector.extract_strided_slice %21 {offsets = [0, 128], sizes = [8, 128], strides = [1, 1]} : vector<8x384xf32> to vector<8x128xf32>
    %29 = arith.negf %28 : vector<8x128xf32>
    %30 = math.exp %29 : vector<8x128xf32>
    %cst_9 = arith.constant 1.000000e+00 : f32
    %31 = vector.broadcast %cst_9 : f32 to vector<8x128xf32>
    %32 = arith.addf %31, %30 : vector<8x128xf32>
    %33 = arith.divf %31, %32 : vector<8x128xf32>
    %34 = vector.extract_strided_slice %21 {offsets = [0, 256], sizes = [8, 128], strides = [1, 1]} : vector<8x384xf32> to vector<8x128xf32>
    %35 = arith.mulf %27, %11 : vector<8x128xf32>
    %36 = arith.addf %34, %35 : vector<8x128xf32>
    %37 = math.tanh %36 : vector<8x128xf32>
    %38 = arith.mulf %33, %37 : vector<8x128xf32>
    %39 = arith.subf %37, %38 : vector<8x128xf32>
    %c1_i32 = arith.constant 1 : i32
    %40 = arith.index_cast %c1_i32 : i32 to index
    %c0_10 = arith.constant 0 : index
    %c0_11 = arith.constant 0 : index
    %41 = vector.load %arg0[%40, %c0_10, %c0_11] : memref<8x8x2xf32, #tpu.memory_space<vmem>>, vector<1x8x2xf32>
    %42 = vector.shape_cast %41 : vector<1x8x2xf32> to vector<8x2xf32>
    %43 = vector.extract_strided_slice %42 {offsets = [0, 0], sizes = [8, 1], strides = [1, 1]} : vector<8x2xf32> to vector<8x1xf32>
    %44 = vector.broadcast %43 : vector<8x1xf32> to vector<8x384xf32>
    %45 = arith.mulf %44, %2 : vector<8x384xf32>
    %46 = arith.addf %8, %45 : vector<8x384xf32>
    %47 = vector.extract_strided_slice %42 {offsets = [0, 1], sizes = [8, 1], strides = [1, 1]} : vector<8x2xf32> to vector<8x1xf32>
    %48 = vector.broadcast %47 : vector<8x1xf32> to vector<8x384xf32>
    %49 = arith.mulf %48, %5 : vector<8x384xf32>
    %50 = arith.addf %46, %49 : vector<8x384xf32>
    %c0_12 = arith.constant 0 : index
    %c0_13 = arith.constant 0 : index
    %51 = vector.load %arg3[%c0_12, %c0_13] : memref<128x384xf32, #tpu.memory_space<vmem>>, vector<128x384xf32>
    %cst_14 = arith.constant dense<0.000000e+00> : vector<8x384xf32>
    %52 = tpu.matmul %39, %51, %cst_14 {dimension_numbers = #tpu.dot_dimension_numbers<[1], [0], [0], [1], [0, 0, 1, 1], [], []>} : vector<8x128xf32>, vector<128x384xf32>, vector<8x384xf32> -> vector<8x384xf32>
    %53 = vector.extract_strided_slice %50 {offsets = [0, 0], sizes = [8, 128], strides = [1, 1]} : vector<8x384xf32> to vector<8x128xf32>
    %54 = vector.extract_strided_slice %52 {offsets = [0, 0], sizes = [8, 128], strides = [1, 1]} : vector<8x384xf32> to vector<8x128xf32>
    %55 = arith.addf %53, %54 : vector<8x128xf32>
    %56 = arith.negf %55 : vector<8x128xf32>
    %57 = math.exp %56 : vector<8x128xf32>
    %cst_15 = arith.constant 1.000000e+00 : f32
    %58 = vector.broadcast %cst_15 : f32 to vector<8x128xf32>
    %59 = arith.addf %58, %57 : vector<8x128xf32>
    %60 = arith.divf %58, %59 : vector<8x128xf32>
    %61 = vector.extract_strided_slice %50 {offsets = [0, 128], sizes = [8, 128], strides = [1, 1]} : vector<8x384xf32> to vector<8x128xf32>
    %62 = vector.extract_strided_slice %52 {offsets = [0, 128], sizes = [8, 128], strides = [1, 1]} : vector<8x384xf32> to vector<8x128xf32>
    %63 = arith.addf %61, %62 : vector<8x128xf32>
    %64 = arith.negf %63 : vector<8x128xf32>
    %65 = math.exp %64 : vector<8x128xf32>
    %cst_16 = arith.constant 1.000000e+00 : f32
    %66 = vector.broadcast %cst_16 : f32 to vector<8x128xf32>
    %67 = arith.addf %66, %65 : vector<8x128xf32>
    %68 = arith.divf %66, %67 : vector<8x128xf32>
    %69 = vector.extract_strided_slice %50 {offsets = [0, 256], sizes = [8, 128], strides = [1, 1]} : vector<8x384xf32> to vector<8x128xf32>
    %70 = vector.extract_strided_slice %52 {offsets = [0, 256], sizes = [8, 128], strides = [1, 1]} : vector<8x384xf32> to vector<8x128xf32>
    %71 = arith.addf %70, %11 : vector<8x128xf32>
    %72 = arith.mulf %60, %71 : vector<8x128xf32>
    %73 = arith.addf %69, %72 : vector<8x128xf32>
    %74 = math.tanh %73 : vector<8x128xf32>
    %75 = arith.subf %39, %74 : vector<8x128xf32>
    %76 = arith.mulf %68, %75 : vector<8x128xf32>
    %77 = arith.addf %74, %76 : vector<8x128xf32>
    %c2_i32 = arith.constant 2 : i32
    %78 = arith.index_cast %c2_i32 : i32 to index
    %c0_17 = arith.constant 0 : index
    %c0_18 = arith.constant 0 : index
    %79 = vector.load %arg0[%78, %c0_17, %c0_18] : memref<8x8x2xf32, #tpu.memory_space<vmem>>, vector<1x8x2xf32>
    %80 = vector.shape_cast %79 : vector<1x8x2xf32> to vector<8x2xf32>
    %81 = vector.extract_strided_slice %80 {offsets = [0, 0], sizes = [8, 1], strides = [1, 1]} : vector<8x2xf32> to vector<8x1xf32>
    %82 = vector.broadcast %81 : vector<8x1xf32> to vector<8x384xf32>
    %83 = arith.mulf %82, %2 : vector<8x384xf32>
    %84 = arith.addf %8, %83 : vector<8x384xf32>
    %85 = vector.extract_strided_slice %80 {offsets = [0, 1], sizes = [8, 1], strides = [1, 1]} : vector<8x2xf32> to vector<8x1xf32>
    %86 = vector.broadcast %85 : vector<8x1xf32> to vector<8x384xf32>
    %87 = arith.mulf %86, %5 : vector<8x384xf32>
    %88 = arith.addf %84, %87 : vector<8x384xf32>
    %c0_19 = arith.constant 0 : index
    %c0_20 = arith.constant 0 : index
    %89 = vector.load %arg3[%c0_19, %c0_20] : memref<128x384xf32, #tpu.memory_space<vmem>>, vector<128x384xf32>
    %cst_21 = arith.constant dense<0.000000e+00> : vector<8x384xf32>
    %90 = tpu.matmul %77, %89, %cst_21 {dimension_numbers = #tpu.dot_dimension_numbers<[1], [0], [0], [1], [0, 0, 1, 1], [], []>} : vector<8x128xf32>, vector<128x384xf32>, vector<8x384xf32> -> vector<8x384xf32>
    %91 = vector.extract_strided_slice %88 {offsets = [0, 0], sizes = [8, 128], strides = [1, 1]} : vector<8x384xf32> to vector<8x128xf32>
    %92 = vector.extract_strided_slice %90 {offsets = [0, 0], sizes = [8, 128], strides = [1, 1]} : vector<8x384xf32> to vector<8x128xf32>
    %93 = arith.addf %91, %92 : vector<8x128xf32>
    %94 = arith.negf %93 : vector<8x128xf32>
    %95 = math.exp %94 : vector<8x128xf32>
    %cst_22 = arith.constant 1.000000e+00 : f32
    %96 = vector.broadcast %cst_22 : f32 to vector<8x128xf32>
    %97 = arith.addf %96, %95 : vector<8x128xf32>
    %98 = arith.divf %96, %97 : vector<8x128xf32>
    %99 = vector.extract_strided_slice %88 {offsets = [0, 128], sizes = [8, 128], strides = [1, 1]} : vector<8x384xf32> to vector<8x128xf32>
    %100 = vector.extract_strided_slice %90 {offsets = [0, 128], sizes = [8, 128], strides = [1, 1]} : vector<8x384xf32> to vector<8x128xf32>
    %101 = arith.addf %99, %100 : vector<8x128xf32>
    %102 = arith.negf %101 : vector<8x128xf32>
    %103 = math.exp %102 : vector<8x128xf32>
    %cst_23 = arith.constant 1.000000e+00 : f32
    %104 = vector.broadcast %cst_23 : f32 to vector<8x128xf32>
    %105 = arith.addf %104, %103 : vector<8x128xf32>
    %106 = arith.divf %104, %105 : vector<8x128xf32>
    %107 = vector.extract_strided_slice %88 {offsets = [0, 256], sizes = [8, 128], strides = [1, 1]} : vector<8x384xf32> to vector<8x128xf32>
    %108 = vector.extract_strided_slice %90 {offsets = [0, 256], sizes = [8, 128], strides = [1, 1]} : vector<8x384xf32> to vector<8x128xf32>
    %109 = arith.addf %108, %11 : vector<8x128xf32>
    %110 = arith.mulf %98, %109 : vector<8x128xf32>
    %111 = arith.addf %107, %110 : vector<8x128xf32>
    %112 = math.tanh %111 : vector<8x128xf32>
    %113 = arith.subf %77, %112 : vector<8x128xf32>
    %114 = arith.mulf %106, %113 : vector<8x128xf32>
    %115 = arith.addf %112, %114 : vector<8x128xf32>
    %c3_i32 = arith.constant 3 : i32
    %116 = arith.index_cast %c3_i32 : i32 to index
    %c0_24 = arith.constant 0 : index
    %c0_25 = arith.constant 0 : index
    %117 = vector.load %arg0[%116, %c0_24, %c0_25] : memref<8x8x2xf32, #tpu.memory_space<vmem>>, vector<1x8x2xf32>
    %118 = vector.shape_cast %117 : vector<1x8x2xf32> to vector<8x2xf32>
    %119 = vector.extract_strided_slice %118 {offsets = [0, 0], sizes = [8, 1], strides = [1, 1]} : vector<8x2xf32> to vector<8x1xf32>
    %120 = vector.broadcast %119 : vector<8x1xf32> to vector<8x384xf32>
    %121 = arith.mulf %120, %2 : vector<8x384xf32>
    %122 = arith.addf %8, %121 : vector<8x384xf32>
    %123 = vector.extract_strided_slice %118 {offsets = [0, 1], sizes = [8, 1], strides = [1, 1]} : vector<8x2xf32> to vector<8x1xf32>
    %124 = vector.broadcast %123 : vector<8x1xf32> to vector<8x384xf32>
    %125 = arith.mulf %124, %5 : vector<8x384xf32>
    %126 = arith.addf %122, %125 : vector<8x384xf32>
    %c0_26 = arith.constant 0 : index
    %c0_27 = arith.constant 0 : index
    %127 = vector.load %arg3[%c0_26, %c0_27] : memref<128x384xf32, #tpu.memory_space<vmem>>, vector<128x384xf32>
    %cst_28 = arith.constant dense<0.000000e+00> : vector<8x384xf32>
    %128 = tpu.matmul %115, %127, %cst_28 {dimension_numbers = #tpu.dot_dimension_numbers<[1], [0], [0], [1], [0, 0, 1, 1], [], []>} : vector<8x128xf32>, vector<128x384xf32>, vector<8x384xf32> -> vector<8x384xf32>
    %129 = vector.extract_strided_slice %126 {offsets = [0, 0], sizes = [8, 128], strides = [1, 1]} : vector<8x384xf32> to vector<8x128xf32>
    %130 = vector.extract_strided_slice %128 {offsets = [0, 0], sizes = [8, 128], strides = [1, 1]} : vector<8x384xf32> to vector<8x128xf32>
    %131 = arith.addf %129, %130 : vector<8x128xf32>
    %132 = arith.negf %131 : vector<8x128xf32>
    %133 = math.exp %132 : vector<8x128xf32>
    %cst_29 = arith.constant 1.000000e+00 : f32
    %134 = vector.broadcast %cst_29 : f32 to vector<8x128xf32>
    %135 = arith.addf %134, %133 : vector<8x128xf32>
    %136 = arith.divf %134, %135 : vector<8x128xf32>
    %137 = vector.extract_strided_slice %126 {offsets = [0, 128], sizes = [8, 128], strides = [1, 1]} : vector<8x384xf32> to vector<8x128xf32>
    %138 = vector.extract_strided_slice %128 {offsets = [0, 128], sizes = [8, 128], strides = [1, 1]} : vector<8x384xf32> to vector<8x128xf32>
    %139 = arith.addf %137, %138 : vector<8x128xf32>
    %140 = arith.negf %139 : vector<8x128xf32>
    %141 = math.exp %140 : vector<8x128xf32>
    %cst_30 = arith.constant 1.000000e+00 : f32
    %142 = vector.broadcast %cst_30 : f32 to vector<8x128xf32>
    %143 = arith.addf %142, %141 : vector<8x128xf32>
    %144 = arith.divf %142, %143 : vector<8x128xf32>
    %145 = vector.extract_strided_slice %126 {offsets = [0, 256], sizes = [8, 128], strides = [1, 1]} : vector<8x384xf32> to vector<8x128xf32>
    %146 = vector.extract_strided_slice %128 {offsets = [0, 256], sizes = [8, 128], strides = [1, 1]} : vector<8x384xf32> to vector<8x128xf32>
    %147 = arith.addf %146, %11 : vector<8x128xf32>
    %148 = arith.mulf %136, %147 : vector<8x128xf32>
    %149 = arith.addf %145, %148 : vector<8x128xf32>
    %150 = math.tanh %149 : vector<8x128xf32>
    %151 = arith.subf %115, %150 : vector<8x128xf32>
    %152 = arith.mulf %144, %151 : vector<8x128xf32>
    %153 = arith.addf %150, %152 : vector<8x128xf32>
    %c4_i32 = arith.constant 4 : i32
    %154 = arith.index_cast %c4_i32 : i32 to index
    %c0_31 = arith.constant 0 : index
    %c0_32 = arith.constant 0 : index
    %155 = vector.load %arg0[%154, %c0_31, %c0_32] : memref<8x8x2xf32, #tpu.memory_space<vmem>>, vector<1x8x2xf32>
    %156 = vector.shape_cast %155 : vector<1x8x2xf32> to vector<8x2xf32>
    %157 = vector.extract_strided_slice %156 {offsets = [0, 0], sizes = [8, 1], strides = [1, 1]} : vector<8x2xf32> to vector<8x1xf32>
    %158 = vector.broadcast %157 : vector<8x1xf32> to vector<8x384xf32>
    %159 = arith.mulf %158, %2 : vector<8x384xf32>
    %160 = arith.addf %8, %159 : vector<8x384xf32>
    %161 = vector.extract_strided_slice %156 {offsets = [0, 1], sizes = [8, 1], strides = [1, 1]} : vector<8x2xf32> to vector<8x1xf32>
    %162 = vector.broadcast %161 : vector<8x1xf32> to vector<8x384xf32>
    %163 = arith.mulf %162, %5 : vector<8x384xf32>
    %164 = arith.addf %160, %163 : vector<8x384xf32>
    %c0_33 = arith.constant 0 : index
    %c0_34 = arith.constant 0 : index
    %165 = vector.load %arg3[%c0_33, %c0_34] : memref<128x384xf32, #tpu.memory_space<vmem>>, vector<128x384xf32>
    %cst_35 = arith.constant dense<0.000000e+00> : vector<8x384xf32>
    %166 = tpu.matmul %153, %165, %cst_35 {dimension_numbers = #tpu.dot_dimension_numbers<[1], [0], [0], [1], [0, 0, 1, 1], [], []>} : vector<8x128xf32>, vector<128x384xf32>, vector<8x384xf32> -> vector<8x384xf32>
    %167 = vector.extract_strided_slice %164 {offsets = [0, 0], sizes = [8, 128], strides = [1, 1]} : vector<8x384xf32> to vector<8x128xf32>
    %168 = vector.extract_strided_slice %166 {offsets = [0, 0], sizes = [8, 128], strides = [1, 1]} : vector<8x384xf32> to vector<8x128xf32>
    %169 = arith.addf %167, %168 : vector<8x128xf32>
    %170 = arith.negf %169 : vector<8x128xf32>
    %171 = math.exp %170 : vector<8x128xf32>
    %cst_36 = arith.constant 1.000000e+00 : f32
    %172 = vector.broadcast %cst_36 : f32 to vector<8x128xf32>
    %173 = arith.addf %172, %171 : vector<8x128xf32>
    %174 = arith.divf %172, %173 : vector<8x128xf32>
    %175 = vector.extract_strided_slice %164 {offsets = [0, 128], sizes = [8, 128], strides = [1, 1]} : vector<8x384xf32> to vector<8x128xf32>
    %176 = vector.extract_strided_slice %166 {offsets = [0, 128], sizes = [8, 128], strides = [1, 1]} : vector<8x384xf32> to vector<8x128xf32>
    %177 = arith.addf %175, %176 : vector<8x128xf32>
    %178 = arith.negf %177 : vector<8x128xf32>
    %179 = math.exp %178 : vector<8x128xf32>
    %cst_37 = arith.constant 1.000000e+00 : f32
    %180 = vector.broadcast %cst_37 : f32 to vector<8x128xf32>
    %181 = arith.addf %180, %179 : vector<8x128xf32>
    %182 = arith.divf %180, %181 : vector<8x128xf32>
    %183 = vector.extract_strided_slice %164 {offsets = [0, 256], sizes = [8, 128], strides = [1, 1]} : vector<8x384xf32> to vector<8x128xf32>
    %184 = vector.extract_strided_slice %166 {offsets = [0, 256], sizes = [8, 128], strides = [1, 1]} : vector<8x384xf32> to vector<8x128xf32>
    %185 = arith.addf %184, %11 : vector<8x128xf32>
    %186 = arith.mulf %174, %185 : vector<8x128xf32>
    %187 = arith.addf %183, %186 : vector<8x128xf32>
    %188 = math.tanh %187 : vector<8x128xf32>
    %189 = arith.subf %153, %188 : vector<8x128xf32>
    %190 = arith.mulf %182, %189 : vector<8x128xf32>
    %191 = arith.addf %188, %190 : vector<8x128xf32>
    %c5_i32 = arith.constant 5 : i32
    %192 = arith.index_cast %c5_i32 : i32 to index
    %c0_38 = arith.constant 0 : index
    %c0_39 = arith.constant 0 : index
    %193 = vector.load %arg0[%192, %c0_38, %c0_39] : memref<8x8x2xf32, #tpu.memory_space<vmem>>, vector<1x8x2xf32>
    %194 = vector.shape_cast %193 : vector<1x8x2xf32> to vector<8x2xf32>
    %195 = vector.extract_strided_slice %194 {offsets = [0, 0], sizes = [8, 1], strides = [1, 1]} : vector<8x2xf32> to vector<8x1xf32>
    %196 = vector.broadcast %195 : vector<8x1xf32> to vector<8x384xf32>
    %197 = arith.mulf %196, %2 : vector<8x384xf32>
    %198 = arith.addf %8, %197 : vector<8x384xf32>
    %199 = vector.extract_strided_slice %194 {offsets = [0, 1], sizes = [8, 1], strides = [1, 1]} : vector<8x2xf32> to vector<8x1xf32>
    %200 = vector.broadcast %199 : vector<8x1xf32> to vector<8x384xf32>
    %201 = arith.mulf %200, %5 : vector<8x384xf32>
    %202 = arith.addf %198, %201 : vector<8x384xf32>
    %c0_40 = arith.constant 0 : index
    %c0_41 = arith.constant 0 : index
    %203 = vector.load %arg3[%c0_40, %c0_41] : memref<128x384xf32, #tpu.memory_space<vmem>>, vector<128x384xf32>
    %cst_42 = arith.constant dense<0.000000e+00> : vector<8x384xf32>
    %204 = tpu.matmul %191, %203, %cst_42 {dimension_numbers = #tpu.dot_dimension_numbers<[1], [0], [0], [1], [0, 0, 1, 1], [], []>} : vector<8x128xf32>, vector<128x384xf32>, vector<8x384xf32> -> vector<8x384xf32>
    %205 = vector.extract_strided_slice %202 {offsets = [0, 0], sizes = [8, 128], strides = [1, 1]} : vector<8x384xf32> to vector<8x128xf32>
    %206 = vector.extract_strided_slice %204 {offsets = [0, 0], sizes = [8, 128], strides = [1, 1]} : vector<8x384xf32> to vector<8x128xf32>
    %207 = arith.addf %205, %206 : vector<8x128xf32>
    %208 = arith.negf %207 : vector<8x128xf32>
    %209 = math.exp %208 : vector<8x128xf32>
    %cst_43 = arith.constant 1.000000e+00 : f32
    %210 = vector.broadcast %cst_43 : f32 to vector<8x128xf32>
    %211 = arith.addf %210, %209 : vector<8x128xf32>
    %212 = arith.divf %210, %211 : vector<8x128xf32>
    %213 = vector.extract_strided_slice %202 {offsets = [0, 128], sizes = [8, 128], strides = [1, 1]} : vector<8x384xf32> to vector<8x128xf32>
    %214 = vector.extract_strided_slice %204 {offsets = [0, 128], sizes = [8, 128], strides = [1, 1]} : vector<8x384xf32> to vector<8x128xf32>
    %215 = arith.addf %213, %214 : vector<8x128xf32>
    %216 = arith.negf %215 : vector<8x128xf32>
    %217 = math.exp %216 : vector<8x128xf32>
    %cst_44 = arith.constant 1.000000e+00 : f32
    %218 = vector.broadcast %cst_44 : f32 to vector<8x128xf32>
    %219 = arith.addf %218, %217 : vector<8x128xf32>
    %220 = arith.divf %218, %219 : vector<8x128xf32>
    %221 = vector.extract_strided_slice %202 {offsets = [0, 256], sizes = [8, 128], strides = [1, 1]} : vector<8x384xf32> to vector<8x128xf32>
    %222 = vector.extract_strided_slice %204 {offsets = [0, 256], sizes = [8, 128], strides = [1, 1]} : vector<8x384xf32> to vector<8x128xf32>
    %223 = arith.addf %222, %11 : vector<8x128xf32>
    %224 = arith.mulf %212, %223 : vector<8x128xf32>
    %225 = arith.addf %221, %224 : vector<8x128xf32>
    %226 = math.tanh %225 : vector<8x128xf32>
    %227 = arith.subf %191, %226 : vector<8x128xf32>
    %228 = arith.mulf %220, %227 : vector<8x128xf32>
    %229 = arith.addf %226, %228 : vector<8x128xf32>
    %c6_i32 = arith.constant 6 : i32
    %230 = arith.index_cast %c6_i32 : i32 to index
    %c0_45 = arith.constant 0 : index
    %c0_46 = arith.constant 0 : index
    %231 = vector.load %arg0[%230, %c0_45, %c0_46] : memref<8x8x2xf32, #tpu.memory_space<vmem>>, vector<1x8x2xf32>
    %232 = vector.shape_cast %231 : vector<1x8x2xf32> to vector<8x2xf32>
    %233 = vector.extract_strided_slice %232 {offsets = [0, 0], sizes = [8, 1], strides = [1, 1]} : vector<8x2xf32> to vector<8x1xf32>
    %234 = vector.broadcast %233 : vector<8x1xf32> to vector<8x384xf32>
    %235 = arith.mulf %234, %2 : vector<8x384xf32>
    %236 = arith.addf %8, %235 : vector<8x384xf32>
    %237 = vector.extract_strided_slice %232 {offsets = [0, 1], sizes = [8, 1], strides = [1, 1]} : vector<8x2xf32> to vector<8x1xf32>
    %238 = vector.broadcast %237 : vector<8x1xf32> to vector<8x384xf32>
    %239 = arith.mulf %238, %5 : vector<8x384xf32>
    %240 = arith.addf %236, %239 : vector<8x384xf32>
    %c0_47 = arith.constant 0 : index
    %c0_48 = arith.constant 0 : index
    %241 = vector.load %arg3[%c0_47, %c0_48] : memref<128x384xf32, #tpu.memory_space<vmem>>, vector<128x384xf32>
    %cst_49 = arith.constant dense<0.000000e+00> : vector<8x384xf32>
    %242 = tpu.matmul %229, %241, %cst_49 {dimension_numbers = #tpu.dot_dimension_numbers<[1], [0], [0], [1], [0, 0, 1, 1], [], []>} : vector<8x128xf32>, vector<128x384xf32>, vector<8x384xf32> -> vector<8x384xf32>
    %243 = vector.extract_strided_slice %240 {offsets = [0, 0], sizes = [8, 128], strides = [1, 1]} : vector<8x384xf32> to vector<8x128xf32>
    %244 = vector.extract_strided_slice %242 {offsets = [0, 0], sizes = [8, 128], strides = [1, 1]} : vector<8x384xf32> to vector<8x128xf32>
    %245 = arith.addf %243, %244 : vector<8x128xf32>
    %246 = arith.negf %245 : vector<8x128xf32>
    %247 = math.exp %246 : vector<8x128xf32>
    %cst_50 = arith.constant 1.000000e+00 : f32
    %248 = vector.broadcast %cst_50 : f32 to vector<8x128xf32>
    %249 = arith.addf %248, %247 : vector<8x128xf32>
    %250 = arith.divf %248, %249 : vector<8x128xf32>
    %251 = vector.extract_strided_slice %240 {offsets = [0, 128], sizes = [8, 128], strides = [1, 1]} : vector<8x384xf32> to vector<8x128xf32>
    %252 = vector.extract_strided_slice %242 {offsets = [0, 128], sizes = [8, 128], strides = [1, 1]} : vector<8x384xf32> to vector<8x128xf32>
    %253 = arith.addf %251, %252 : vector<8x128xf32>
    %254 = arith.negf %253 : vector<8x128xf32>
    %255 = math.exp %254 : vector<8x128xf32>
    %cst_51 = arith.constant 1.000000e+00 : f32
    %256 = vector.broadcast %cst_51 : f32 to vector<8x128xf32>
    %257 = arith.addf %256, %255 : vector<8x128xf32>
    %258 = arith.divf %256, %257 : vector<8x128xf32>
    %259 = vector.extract_strided_slice %240 {offsets = [0, 256], sizes = [8, 128], strides = [1, 1]} : vector<8x384xf32> to vector<8x128xf32>
    %260 = vector.extract_strided_slice %242 {offsets = [0, 256], sizes = [8, 128], strides = [1, 1]} : vector<8x384xf32> to vector<8x128xf32>
    %261 = arith.addf %260, %11 : vector<8x128xf32>
    %262 = arith.mulf %250, %261 : vector<8x128xf32>
    %263 = arith.addf %259, %262 : vector<8x128xf32>
    %264 = math.tanh %263 : vector<8x128xf32>
    %265 = arith.subf %229, %264 : vector<8x128xf32>
    %266 = arith.mulf %258, %265 : vector<8x128xf32>
    %267 = arith.addf %264, %266 : vector<8x128xf32>
    %c7_i32 = arith.constant 7 : i32
    %268 = arith.index_cast %c7_i32 : i32 to index
    %c0_52 = arith.constant 0 : index
    %c0_53 = arith.constant 0 : index
    %269 = vector.load %arg0[%268, %c0_52, %c0_53] : memref<8x8x2xf32, #tpu.memory_space<vmem>>, vector<1x8x2xf32>
    %270 = vector.shape_cast %269 : vector<1x8x2xf32> to vector<8x2xf32>
    %271 = vector.extract_strided_slice %270 {offsets = [0, 0], sizes = [8, 1], strides = [1, 1]} : vector<8x2xf32> to vector<8x1xf32>
    %272 = vector.broadcast %271 : vector<8x1xf32> to vector<8x384xf32>
    %273 = arith.mulf %272, %2 : vector<8x384xf32>
    %274 = arith.addf %8, %273 : vector<8x384xf32>
    %275 = vector.extract_strided_slice %270 {offsets = [0, 1], sizes = [8, 1], strides = [1, 1]} : vector<8x2xf32> to vector<8x1xf32>
    %276 = vector.broadcast %275 : vector<8x1xf32> to vector<8x384xf32>
    %277 = arith.mulf %276, %5 : vector<8x384xf32>
    %278 = arith.addf %274, %277 : vector<8x384xf32>
    %c0_54 = arith.constant 0 : index
    %c0_55 = arith.constant 0 : index
    %279 = vector.load %arg3[%c0_54, %c0_55] : memref<128x384xf32, #tpu.memory_space<vmem>>, vector<128x384xf32>
    %cst_56 = arith.constant dense<0.000000e+00> : vector<8x384xf32>
    %280 = tpu.matmul %267, %279, %cst_56 {dimension_numbers = #tpu.dot_dimension_numbers<[1], [0], [0], [1], [0, 0, 1, 1], [], []>} : vector<8x128xf32>, vector<128x384xf32>, vector<8x384xf32> -> vector<8x384xf32>
    %281 = vector.extract_strided_slice %278 {offsets = [0, 0], sizes = [8, 128], strides = [1, 1]} : vector<8x384xf32> to vector<8x128xf32>
    %282 = vector.extract_strided_slice %280 {offsets = [0, 0], sizes = [8, 128], strides = [1, 1]} : vector<8x384xf32> to vector<8x128xf32>
    %283 = arith.addf %281, %282 : vector<8x128xf32>
    %284 = arith.negf %283 : vector<8x128xf32>
    %285 = math.exp %284 : vector<8x128xf32>
    %cst_57 = arith.constant 1.000000e+00 : f32
    %286 = vector.broadcast %cst_57 : f32 to vector<8x128xf32>
    %287 = arith.addf %286, %285 : vector<8x128xf32>
    %288 = arith.divf %286, %287 : vector<8x128xf32>
    %289 = vector.extract_strided_slice %278 {offsets = [0, 128], sizes = [8, 128], strides = [1, 1]} : vector<8x384xf32> to vector<8x128xf32>
    %290 = vector.extract_strided_slice %280 {offsets = [0, 128], sizes = [8, 128], strides = [1, 1]} : vector<8x384xf32> to vector<8x128xf32>
    %291 = arith.addf %289, %290 : vector<8x128xf32>
    %292 = arith.negf %291 : vector<8x128xf32>
    %293 = math.exp %292 : vector<8x128xf32>
    %cst_58 = arith.constant 1.000000e+00 : f32
    %294 = vector.broadcast %cst_58 : f32 to vector<8x128xf32>
    %295 = arith.addf %294, %293 : vector<8x128xf32>
    %296 = arith.divf %294, %295 : vector<8x128xf32>
    %297 = vector.extract_strided_slice %278 {offsets = [0, 256], sizes = [8, 128], strides = [1, 1]} : vector<8x384xf32> to vector<8x128xf32>
    %298 = vector.extract_strided_slice %280 {offsets = [0, 256], sizes = [8, 128], strides = [1, 1]} : vector<8x384xf32> to vector<8x128xf32>
    %299 = arith.addf %298, %11 : vector<8x128xf32>
    %300 = arith.mulf %288, %299 : vector<8x128xf32>
    %301 = arith.addf %297, %300 : vector<8x128xf32>
    %302 = math.tanh %301 : vector<8x128xf32>
    %303 = arith.subf %267, %302 : vector<8x128xf32>
    %304 = arith.mulf %296, %303 : vector<8x128xf32>
    %305 = arith.addf %302, %304 : vector<8x128xf32>
    %c7_i32_59 = arith.constant 7 : i32
    %c0_60 = arith.constant 0 : index
    %c0_61 = arith.constant 0 : index
    %306 = vector.load %arg5[%c0_60, %c0_61] : memref<128x128xf32, #tpu.memory_space<vmem>>, vector<128x128xf32>
    %cst_62 = arith.constant dense<0.000000e+00> : vector<8x128xf32>
    %307 = tpu.matmul %305, %306, %cst_62 {dimension_numbers = #tpu.dot_dimension_numbers<[1], [0], [0], [1], [0, 0, 1, 1], [], []>} : vector<8x128xf32>, vector<128x128xf32>, vector<8x128xf32> -> vector<8x128xf32>
    %c0_63 = arith.constant 0 : index
    %c0_64 = arith.constant 0 : index
    %308 = vector.load %arg6[%c0_63, %c0_64] : memref<1x128xf32, #tpu.memory_space<vmem>>, vector<1x128xf32>
    %309 = vector.broadcast %308 : vector<1x128xf32> to vector<8x128xf32>
    %310 = arith.addf %307, %309 : vector<8x128xf32>
    %c0_65 = arith.constant 0 : index
    %c0_66 = arith.constant 0 : index
    %311 = vector.load %arg7[%c0_65, %c0_66] : memref<8x128xf32, #tpu.memory_space<vmem>>, vector<8x128xf32>
    tpu.vector_store %arg7[%c0_65, %c0_66], %310 {strides = array<i32>} : memref<8x128xf32, #tpu.memory_space<vmem>>, vector<8x128xf32>,
    return
  }
}

</mosaic_0001>

<bundles_post_ra>
// kernel: gru_model_forward.1
= control target key start
LH: loop header
LB: loop body
LE: loop exit
PB: predicated region body
PF: predicated region fallthrough
CT: control target
= control target key end

     0   :  { %v2352_v0 = vmov 0   ;;  %v2354_v2 = vmov 1   ;;  %s2344_s0 = inlined_call_operand.vmem [shape: f32[8,8,2], index: 0, kind: input, shape index: {}]   ;;  %s2345_s4 = inlined_call_operand.vmem [shape: f32[1,128], index: 4, kind: input, shape index: {}]   ;;  %s2346_s3 = inlined_call_operand.vmem [shape: f32[128,384], index: 3, kind: input, shape index: {}]   ;;  %s2347_s1 = inlined_call_operand.vmem [shape: f32[2,384], index: 1, kind: input, shape index: {}]   ;;  %s2348_s2 = inlined_call_operand.vmem [shape: f32[1,384], index: 2, kind: input, shape index: {}]   ;;  %s2349_s6 = inlined_call_operand.vmem [shape: f32[1,128], index: 6, kind: input, shape index: {}]   ;;  %s2350_s5 = inlined_call_operand.vmem [shape: f32[128,128], index: 5, kind: input, shape index: {}]   ;;  %s2351_s7 = inlined_call_operand.vmem [shape: f32[8,128], index: 7, kind: output, shape index: {}]  }
   0x1   :  { %1149 = vset.pattern.permute.xlu0 %v2352_v0  ;;  %v55_v1 = vld [vmem:[%s2344_s0] sm:$0xff]  ;;  %1151 = vset.pattern.permute.xlu1 %v2352_v0  ;;  %v1346_v3 = vld [vmem:[%s2346_s3 + $0x168] sm:$0xff]  ;;  %v1351_v4 = vld [vmem:[%s2346_s3 + $0x170] sm:$0xff] }
   0x2   :  { %58 = vperm.xlu0 %1149, %v55_v1   ;;  %1153 = vset.pattern.permute.xlu2 %v2352_v0  ;;  %2403 = vst [vmem:[#allocation2_spill] sm:$0xff] %v1351_v4  ;;  %v1356_v5 = vld [vmem:[%s2346_s3 + $0x178] sm:$0xff]  ;;  %v1364_v6 = vld [vmem:[%s2346_s3 + $0x150] sm:$0xff]  ;;  %v1374_v8 = vld [vmem:[%s2346_s3 + $0x160] sm:$0xff] }
   0x3   :  { %191 = vmatpush.msra.mxu0 %v1346_v3  ;;  %211 = vmatpush.msra.mxu1 %v1351_v4  ;;  %v1369_v7 = vld [vmem:[%s2346_s3 + $0x158] sm:$0xff]  ;;  %v1380_v9 = vld [vmem:[%s2347_s1] ss:$2 sm:$0x7]  ;;  %v1398_v12 = vld [vmem:[%s2346_s3 + $0x148] sm:$0xff] }
   0x4   :  { %231 = vmatpush.msra.mxu2 %v1356_v5  ;;  %2404 = vst [vmem:[#allocation3_spill] sm:$0xff] %v1369_v7  ;;  %321 = vmatpush.msra.mxu3 %v1346_v3  ;;  %v1388_v10 = vld [vmem:[%s2346_s3 + $0x138] sm:$0xff]  ;;  %v1393_v11 = vld [vmem:[%s2346_s3 + $0x140] sm:$0xff]  ;;  %v1414_v15 = vld [vmem:[%s2346_s3 + $0x128] sm:$0xff]  ;;  %v1423_v17 = vperm.slane %v1380_v9, 0  ;;  %v1433_v19 = vperm.slane %v1380_v9, 1 }
   0x5   :  { %192 = vmatpush.msra.mxu0 %v1364_v6  ;;  %212 = vmatpush.msra.mxu1 %v1369_v7  ;;  %v1409_v14 = vld [vmem:[%s2346_s3 + $0x120] sm:$0xff]  ;;  %v1419_v16 = vld [vmem:[%s2346_s3 + $0x130] sm:$0xff]  ;;  %v1439_v20 = vld [vmem:[%s2346_s3 + $0x108] sm:$0xff] }
   0x6   :  { %232 = vmatpush.msra.mxu2 %v1374_v8  ;;  %322 = vmatpush.msra.mxu3 %v1364_v6  ;;  %2405 = vst [vmem:[#allocation4_spill] sm:$0xff] %v1423_v17  ;;  %v1428_v18 = vld [vmem:[%s2348_s2] sm:$0x7]  ;;  %v1444_v21 = vld [vmem:[%s2346_s3 + $0x110] sm:$0xff]  ;;  %v1449_v22 = vld [vmem:[%s2346_s3 + $0x118] sm:$0xff] }
   0x7   :  { %193 = vmatpush.msra.mxu0 %v1388_v10  ;;  %213 = vmatpush.msra.mxu1 %v1393_v11  ;;  %2406 = vst [vmem:[#allocation5_spill] sm:$0xff] %v1433_v19  ;;  %v1455_v23 = vld [vmem:[%s2347_s1 + $0x1] ss:$2 sm:$0x7]  ;;  %v1463_v24 = vld [vmem:[%s2346_s3 + $0xf0] sm:$0xff]  ;;  %v1468_v25 = vld [vmem:[%s2346_s3 + $0xf8] sm:$0xff] }
   0x8   :  { %233 = vmatpush.msra.mxu2 %v1398_v12  ;;  %323 = vmatpush.msra.mxu3 %v1388_v10  ;;  %v1473_v26 = vld [vmem:[%s2346_s3 + $0x100] sm:$0xff]  ;;  %v1477_v27 = vperm.slane %v1428_v18, 0  ;;  %v1484_v29 = vperm.slane %v1428_v18, 1  ;;  %v1489_v31 = vperm.slane %v1455_v23, 0  ;;  %v1492_v32 = vperm.slane %v1455_v23, 1  ;;  %v1498_v33 = vld [vmem:[%s2346_s3 + $0xd8] sm:$0xff] }
   0x9   :  { %194 = vmatpush.msra.mxu0 %v1409_v14  ;;  %214 = vmatpush.msra.mxu1 %v1414_v15  ;;  %v1503_v34 = vld [vmem:[%s2346_s3 + $0xe0] sm:$0xff]  ;;  %v1508_v35 = vld [vmem:[%s2346_s3 + $0xe8] sm:$0xff]  ;;  %v1527_v38 = vld [vmem:[%s2346_s3 + $0xd0] sm:$0xff] }
   0xa   :  { %1150 = vset.pattern.permute.xlu0 %v2354_v2  ;;  %234 = vmatpush.msra.mxu2 %v1419_v16  ;;  %2407 = vst [vmem:[#allocation6_spill] sm:$0xff] %v1477_v27  ;;  %v1517_v36 = vld [vmem:[%s2346_s3 + $0xc0] sm:$0xff]  ;;  %v1522_v37 = vld [vmem:[%s2346_s3 + $0xc8] sm:$0xff]  ;;  %v1549_v45 = vld [vmem:[%s2346_s3 + $0xb0] sm:$0xff] }
   0xb   :  { %68 = vperm.xlu0 %1150, %v55_v1   ;;  %324 = vmatpush.msra.mxu3 %v1409_v14  ;;  %2408 = vst [vmem:[#allocation7_spill] sm:$0xff] %v1484_v29  ;;  %v1544_v44 = vld [vmem:[%s2346_s3 + $0xa8] sm:$0xff]  ;;  %v1554_v46 = vld [vmem:[%s2346_s3 + $0xb8] sm:$0xff]  ;;  %v1563_v49 = vld [vmem:[%s2346_s3 + $0x90] sm:$0xff] }
   0xc   :  { %195 = vmatpush.msra.mxu0 %v1439_v20  ;;  %215 = vmatpush.msra.mxu1 %v1444_v21  ;;  %2409 = vst [vmem:[#allocation8_spill] sm:$0xff] %v1489_v31  ;;  %v1568_v50 = vld [vmem:[%s2346_s3 + $0x98] sm:$0xff]  ;;  %v1573_v51 = vld [vmem:[%s2346_s3 + $0xa0] sm:$0xff]  ;;  %v1595_v56 = vld [vmem:[%s2346_s3 + $0x88] sm:$0xff] }
   0xd   :  { %235 = vmatpush.msra.mxu2 %v1449_v22  ;;  %325 = vmatpush.msra.mxu3 %v1439_v20  ;;  %2410 = vst [vmem:[#allocation9_spill] sm:$0xff] %v1492_v32  ;;  %v1582_v54 = vld [vmem:[%s2346_s3 + $0x78] sm:$0xff]  ;;  %v1587_v55 = vld [vmem:[%s2346_s3 + $0x80] sm:$0xff]  ;;  %v1605_v58 = vld [vmem:[%s2346_s3 + $0x68] sm:$0xff] }
   0xe   :  { %196 = vmatpush.msra.mxu0 %v1463_v24  ;;  %216 = vmatpush.msra.mxu1 %v1468_v25  ;;  %v1600_v57 = vld [vmem:[%s2346_s3 + $0x60] sm:$0xff]  ;;  %2412 = vst [vmem:[#allocation11_spill] sm:$0xff] %v1605_v58  ;;  %v1611_v59 = vld [vmem:[%s2346_s3 + $0x70] sm:$0xff]  ;;  %v1126_v60 = vld [vmem:[%s2344_s0 + $0x8] sm:$0xff] }
   0xf   :  { %236 = vmatpush.msra.mxu2 %v1473_v26  ;;  %326 = vmatpush.msra.mxu3 %v1463_v24  ;;  %2411 = vst [vmem:[#allocation10_spill] sm:$0xff] %v1600_v57  ;;  %v1619_v61 = vld [vmem:[%s2346_s3 + $0x48] sm:$0xff]  ;;  %v1627_v62 = vld [vmem:[%s2346_s3 + $0x50] sm:$0xff]  ;;  %v1632_v63 = vld [vmem:[%s2346_s3 + $0x58] sm:$0xff] }
  0x10   :  { %197 = vmatpush.msra.mxu0 %v1498_v33  ;;  %217 = vmatpush.msra.mxu1 %v1503_v34  ;;  %2413 = vst [vmem:[#allocation12_spill] sm:$0xff] %v1619_v61  ;;  %v1638_v1 = vld [vmem:[%s2346_s3 + $0x30] sm:$0xff] }
  0x11   :  { %237 = vmatpush.msra.mxu2 %v1508_v35  ;;  %327 = vmatpush.msra.mxu3 %v1498_v33  ;;  %2414 = vst [vmem:[#allocation13_spill] sm:$0xff] %v1627_v62 }
  0x12   :  { %198 = vmatpush.msra.mxu0 %v1517_v36  ;;  %218 = vmatpush.msra.mxu1 %v1522_v37  ;;  %2415 = vst [vmem:[#allocation14_spill] sm:$0xff] %v1632_v63 }
  0x13   :  { %1156 = vset.pattern.permute.xlu0 %v2352_v0  ;;  %238 = vmatpush.msra.mxu2 %v1527_v38  ;;  %2416 = vst [vmem:[#allocation15_spill] sm:$0xff] %v1638_v1  ;;  %v1688_v0 = vld [vmem:[%s2346_s3 + $0x10] sm:$0xff] }
  0x14   :  { %328 = vmatpush.msra.mxu3 %v1517_v36  ;;  %199 = vmatpush.msra.mxu0 %v1544_v44  ;;  %2424 = vst [vmem:[#allocation23_spill] sm:$0xff] %v1688_v0 }
  0x15   :  { %219 = vmatpush.msra.mxu1 %v1549_v45  ;;  %239 = vmatpush.msra.mxu2 %v1554_v46 }
  0x16   :  { %329 = vmatpush.msra.mxu3 %v1544_v44  ;;  %200 = vmatpush.msra.mxu0 %v1563_v49 }
  0x17   :  { %220 = vmatpush.msra.mxu1 %v1568_v50  ;;  %240 = vmatpush.msra.mxu2 %v1573_v51 }
  0x18   :  { %330 = vmatpush.msra.mxu3 %v1563_v49  ;;  %201 = vmatpush.msra.mxu0 %v1582_v54 }
  0x19   :  { %221 = vmatpush.msra.mxu1 %v1587_v55  ;;  %241 = vmatpush.msra.mxu2 %v1595_v56 }
  0x1a   :  { %331 = vmatpush.msra.mxu3 %v1582_v54  ;;  %202 = vmatpush.msra.mxu0 %v1600_v57 }
  0x1b   :  { %222 = vmatpush.msra.mxu1 %v1605_v58  ;;  %242 = vmatpush.msra.mxu2 %v1611_v59 }
  0x1c   :  { %124 = vperm.xlu1 %1151, %v1126_v60   ;;  %203 = vmatpush.msra.mxu0 %v1619_v61 }
  0x1d   :  { %223 = vmatpush.msra.mxu1 %v1627_v62  ;;  %243 = vmatpush.msra.mxu2 %v1632_v63 }
  0x1e   :  { %332 = vmatpush.msra.mxu3 %v1600_v57  ;;  %204 = vmatpush.msra.mxu0 %v1638_v1 }
  0x20   :  { %333 = vmatpush.msra.mxu3 %v1619_v61 }
  0x22   :  { %334 = vmatpush.msra.mxu3 %v1638_v1 }
  0x74   :  { %v1403_v13 = vpop.permute.xlu0 %58 }
  0x75   :  { %v61_v28 = vmul.f32 %v1403_v13, %v1423_v17  ;;  %v62_v30 = vmul.f32 %v1403_v13, %v1433_v19  ;;  %v2427_v17 = vmov 0  }
  0x77   :  { %v64_v39 = vadd.f32 %v61_v28, %v1477_v27  ;;  %v65_v41 = vadd.f32 %v62_v30, %v1484_v29  ;;  %v1643_v28 = vld [vmem:[%s2346_s3 + $0x38] sm:$0xff]  ;;  %v1650_v30 = vld [vmem:[%s2346_s3 + $0x40] sm:$0xff] }
  0x78   :  { %2417 = vst [vmem:[#allocation16_spill] sm:$0xff] %v1643_v28  ;;  %224 = vmatpush.msra.mxu1 %v1643_v28  ;;  %244 = vmatpush.msra.mxu2 %v1650_v30 }
  0x79   :  { %2418 = vst [vmem:[#allocation17_spill] sm:$0xff] %v1650_v30 }
  0x7d   :  { %v1531_v40 = vpop.permute.xlu0 %68 }
  0x7e   :  { %v71_v42 = vmul.f32 %v1531_v40, %v1489_v31  ;;  %v72_v43 = vmul.f32 %v1531_v40, %v1492_v32  ;;  %v1720_v32 = vperm.slane %v1455_v23, 2 }
  0x80   :  { %v74_v47 = vadd.f32 %v71_v42, %v64_v39  ;;  %v75_v48 = vadd.f32 %v72_v43, %v65_v41  ;;  %v1656_v39 = vld [vmem:[%s2346_s3 + $0x18] sm:$0xff]  ;;  %v1661_v41 = vld [vmem:[%s2346_s3 + $0x20] sm:$0xff]  ;;  %v1669_v42 = vld [vmem:[%s2346_s3 + $0x28] sm:$0xff] }
  0x81   :  { %2419 = vst [vmem:[#allocation18_spill] sm:$0xff] %v1656_v39  ;;  %205 = vmatpush.msra.mxu0 %v1656_v39  ;;  %225 = vmatpush.msra.mxu1 %v1661_v41 }
  0x82   :  { %v1124_v52 = vmul.f32 -1.442695, %v74_v47  ;;  %v1125_v53 = vmul.f32 -1.442695, %v75_v48  ;;  %2420 = vst [vmem:[#allocation19_spill] sm:$0xff] %v1661_v41  ;;  %v1675_v47 = vld [vmem:[%s2346_s3] sm:$0xff]  ;;  %245 = vmatpush.msra.mxu2 %v1669_v42  ;;  %335 = vmatpush.msra.mxu3 %v1656_v39 }
  0x83   :  { %2421 = vst [vmem:[#allocation20_spill] sm:$0xff] %v1669_v42  ;;  %v1680_v48 = vld [vmem:[%s2346_s3 + $0x8] sm:$0xff]  ;;  %206 = vmatpush.msra.mxu0 %v1675_v47 }
  0x84   :  { %1164 = vpow2.f32 %v1124_v52  ;;  %2422 = vst [vmem:[#allocation21_spill] sm:$0xff] %v1675_v47  ;;  %226 = vmatpush.msra.mxu1 %v1680_v48  ;;  %246 = vmatpush.msra.mxu2 %v1688_v0 }
  0x85   :  { %1166 = vpow2.f32 %v1125_v53  ;;  %2423 = vst [vmem:[#allocation22_spill] sm:$0xff] %v1680_v48  ;;  %341 = vmatpush.msrb.mxu0 %v1351_v4  ;;  %336 = vmatpush.msra.mxu3 %v1675_v47 }
  0x86   :  { %361 = vmatpush.msrb.mxu1 %v1356_v5  ;;  %451 = vmatpush.msrb.mxu2 %v1346_v3 }
  0x87   :  { %342 = vmatpush.msrb.mxu0 %v1369_v7  ;;  %471 = vmatpush.msrb.mxu3 %v1351_v4 }
  0x88   :  { %362 = vmatpush.msrb.mxu1 %v1374_v8  ;;  %452 = vmatpush.msrb.mxu2 %v1364_v6 }
  0x89   :  { %343 = vmatpush.msrb.mxu0 %v1393_v11  ;;  %472 = vmatpush.msrb.mxu3 %v1369_v7 }
  0x8a   :  { %v1165_v43 = vpop.eup %1164  ;;  %363 = vmatpush.msrb.mxu1 %v1398_v12  ;;  %453 = vmatpush.msrb.mxu2 %v1388_v10 }
  0x8b   :  { %v1167_v52 = vpop.eup %1166  ;;  %v80_v53 = vadd.f32 1.0, %v1165_v43  ;;  %v2425_v43 = vmov 1   ;;  %344 = vmatpush.msrb.mxu0 %v1414_v15  ;;  %473 = vmatpush.msrb.mxu3 %v1393_v11 }
  0x8c   :  { %v1690_v2 = vadd.f32 1.0, %v1167_v52  ;;  %1152 = vset.pattern.permute.xlu1 %v2425_v43  ;;  %v1711_v43 = vperm.slane %v1380_v9, 2  ;;  %364 = vmatpush.msrb.mxu1 %v1419_v16  ;;  %v1725_v9 = vperm.slane %v1428_v18, 2  ;;  %v1738_v18 = vld [vmem:[%s2345_s4] ss:$0 sm:$0xff] }
  0x8d   :  { %1168 = vrcp.f32 %v80_v53  ;;  %134 = vperm.xlu1 %1152, %v1126_v60   ;;  %v92_v19 = vand.u32 2147483648, %v80_v53  ;;  %345 = vmatpush.msrb.mxu0 %v1444_v21  ;;  %v90_v23 = vand.u32 2147483647, %v80_v53  ;;  %vm86_vm1 = vweird.f32 %v80_v53 }
  0x8e   :  { %1170 = vrcp.f32 %v1690_v2  ;;  %2426 = vst [vmem:[#allocation24_spill] sm:$0xff] %v1711_v43  ;;  %v63_v4 = vmul.f32 %v1403_v13, %v1711_v43  ;;  %365 = vmatpush.msrb.mxu1 %v1449_v22  ;;  %454 = vmatpush.msrb.mxu2 %v1409_v14  ;;  %v73_v13 = vmul.f32 %v1531_v40, %v1720_v32  ;;  %vm105_vm5 = vweird.f32 %v1690_v2 }
  0x8f   :  { %346 = vmatpush.msrb.mxu0 %v1468_v25  ;;  %474 = vmatpush.msrb.mxu3 %v1414_v15  ;;  %vm91_vm3 = vcmp.eq.f32.partialorder %v90_v23, 8.507059e+37 }
  0x90   :  { %366 = vmatpush.msrb.mxu1 %v1473_v26  ;;  %455 = vmatpush.msrb.mxu2 %v1439_v20 }
  0x91   :  { %347 = vmatpush.msrb.mxu0 %v1503_v34  ;;  %475 = vmatpush.msrb.mxu3 %v1444_v21 }
  0x92   :  { %367 = vmatpush.msrb.mxu1 %v1508_v35  ;;  %456 = vmatpush.msrb.mxu2 %v1463_v24 }
  0x93   :  { %v1169_v52 = vpop.eup %1168  ;;  %348 = vmatpush.msrb.mxu0 %v1522_v37  ;;  %476 = vmatpush.msrb.mxu3 %v1468_v25 }
  0x94   :  { %v1708_v60 = vpop.eup %1170  ;;  %v82_v29 = vmul.f32 %v1169_v52, %v80_v53  ;;  %vm87_vm0 = vweird.f32 %v1169_v52  ;;  %368 = vmatpush.msrb.mxu1 %v1527_v38  ;;  %457 = vmatpush.msrb.mxu2 %v1498_v33 }
  0x95   :  { %v101_v27 = vmul.f32 %v1708_v60, %v1690_v2  ;;  %1155 = vset.pattern.permute.xlu1 %v2427_v17  ;;  %vm88_vm2 = vmor %vm86_vm1, %vm87_vm0  ;;  %v66_v17 = vadd.f32 %v63_v4, %v1725_v9  ;;  %349 = vmatpush.msrb.mxu0 %v1549_v45  ;;  %vm106_vm4 = vweird.f32 %v1708_v60 }
  0x96   :  { %v83_v31 = vsub.f32 1.0, %v82_v29  ;;  %369 = vmatpush.msrb.mxu1 %v1554_v46  ;;  %477 = vmatpush.msrb.mxu3 %v1503_v34  ;;  %vm107_vm6 = vmor %vm105_vm5, %vm106_vm4 }
  0x97   :  { %v102_v29 = vsub.f32 1.0, %v101_v27  ;;  %v93_v27 = vor.u32 1.1754944e-38, %v92_v19  ;;  %v76_v19 = vadd.f32 %v73_v13, %v66_v17  ;;  %350 = vmatpush.msrb.mxu0 %v1568_v50  ;;  %458 = vmatpush.msrb.mxu2 %v1517_v36  ;;  %v111_v17 = vand.u32 2147483648, %v1690_v2 }
  0x98   :  { %v84_v7 = vmul.f32 %v1169_v52, %v83_v31  ;;  %370 = vmatpush.msrb.mxu1 %v1573_v51  ;;  %478 = vmatpush.msrb.mxu3 %v1522_v37 }
  0x99   :  { %v103_v40 = vmul.f32 %v1708_v60, %v102_v29  ;;  %351 = vmatpush.msrb.mxu0 %v1587_v55  ;;  %459 = vmatpush.msrb.mxu2 %v1544_v44  ;;  %v112_v29 = vor.u32 1.1754944e-38, %v111_v17 }
  0x9a   :  { %v85_v31 = vadd.f32 %v1169_v52, %v84_v7  ;;  %371 = vmatpush.msrb.mxu1 %v1595_v56  ;;  %479 = vmatpush.msrb.mxu3 %v1549_v45 }
  0x9b   :  { %352 = vmatpush.msrb.mxu0 %v1605_v58  ;;  %460 = vmatpush.msrb.mxu2 %v1563_v49 }
  0x9c   :  { %v89_v43 = vsel %vm88_vm2, %v1169_v52, %v85_v31  ;;  %v109_v52 = vand.u32 2147483647, %v1690_v2  ;;  %372 = vmatpush.msrb.mxu1 %v1611_v59  ;;  %480 = vmatpush.msrb.mxu3 %v1568_v50 }
  0x9d   :  { %v94_v7 = vsel %vm91_vm3, %v93_v27, %v89_v43  ;;  %v104_v43 = vadd.f32 %v1708_v60, %v103_v40  ;;  %353 = vmatpush.msrb.mxu0 %v1627_v62  ;;  %461 = vmatpush.msrb.mxu2 %v1582_v54  ;;  %v2428_v27 = vld [vmem:[#allocation2_spill] sm:$0xff]  ;;  %v125_v40 = vpop.permute.xlu1 %124 }
  0x9e   :  { %v115_v53 = vmul.f32 %v1738_v18, %v94_v7  ;;  %vm110_vm7 = vcmp.eq.f32.partialorder %v109_v52, 8.507059e+37  ;;  %373 = vmatpush.msrb.mxu1 %v1632_v63  ;;  %481 = vmatpush.msrb.mxu3 %v1587_v55  ;;  %v2429_v7 = vld [vmem:[#allocation3_spill] sm:$0xff]  ;;  %v2432_v52 = vld [vmem:[#allocation8_spill] sm:$0xff] }
  0x9f   :  { %v108_v23 = vsel %vm107_vm6, %v1708_v60, %v104_v43  ;;  %354 = vmatpush.msrb.mxu0 %v1643_v28  ;;  %462 = vmatpush.msrb.mxu2 %v1600_v57 }
  0xa0   :  { %v116_v4 = vadd.f32 %v115_v53, %v76_v19  ;;  %v113_v13 = vsel %vm110_vm7, %v112_v29, %v108_v23  ;;  %374 = vmatpush.msrb.mxu1 %v1650_v30  ;;  %482 = vmatpush.msrb.mxu3 %v1605_v58  ;;  %v2430_v19 = vld [vmem:[#allocation4_spill] sm:$0xff]  ;;  %v2433_v29 = vld [vmem:[#allocation9_spill] sm:$0xff] }
  0xa1   :  { %355 = vmatpush.msrb.mxu0 %v1661_v41  ;;  %463 = vmatpush.msrb.mxu2 %v1619_v61  ;;  %v127_v53 = vmul.f32 %v125_v40, %v2430_v19 }
  0xa2   :  { %1172 = vtanh.f32 %v116_v4  ;;  %375 = vmatpush.msrb.mxu1 %v1669_v42  ;;  %483 = vmatpush.msrb.mxu3 %v1627_v62  ;;  %v2431_v4 = vld [vmem:[#allocation5_spill] sm:$0xff] }
  0xa3   :  { %356 = vmatpush.msrb.mxu0 %v1680_v48  ;;  %464 = vmatpush.msrb.mxu2 %v1638_v1  ;;  %v128_v43 = vmul.f32 %v125_v40, %v2431_v4 }
  0xa4   :  { %376 = vmatpush.msrb.mxu1 %v1688_v0  ;;  %484 = vmatpush.msrb.mxu3 %v1643_v28 }
  0xa5   :  { %465 = vmatpush.msrb.mxu2 %v1656_v39 }
  0xa6   :  { %485 = vmatpush.msrb.mxu3 %v1661_v41 }
  0xa7   :  { %466 = vmatpush.msrb.mxu2 %v1675_v47 }
  0xa8   :  { %v1173_v2 = vpop.eup %1172  ;;  %486 = vmatpush.msrb.mxu3 %v1680_v48 }
  0xa9   :  { %v118_v60 = vmul.f32 %v1173_v2, %v113_v13  ;;  %v2434_v13 = vld [vmem:[#allocation6_spill] sm:$0xff] }
  0xab   :  { %v1785_v31 = vsub.f32 %v1173_v2, %v118_v60  ;;  %v130_v60 = vadd.f32 %v127_v53, %v2434_v13  ;;  %v1132_v53 = vld [vmem:[%s2344_s0 + $0x18] sm:$0xff] }
  0xac   :  { %432 = vperm.xlu1 %1155, %v1132_v53  }
  0xad   :  { %207 = vmatmul.f32.vlgmr.msra.gmra.mxu0 %v1785_v31  ;;  %227 = vmatmul.f32.vlgmr.msra.gmra.mxu1 %v1785_v31 }
  0xae   :  { %247 = vmatmul.f32.vlgmr.msra.gmra.mxu2 %v1785_v31  ;;  %491 = vmatpush.msra.mxu0 %v1356_v5 }
  0xaf   :  { %581 = vmatpush.msra.mxu1 %v1346_v3  ;;  %601 = vmatpush.msra.mxu2 %v2428_v27 }
  0xb0   :  { %492 = vmatpush.msra.mxu0 %v1374_v8 }
  0xb1   :  { %582 = vmatpush.msra.mxu1 %v1364_v6  ;;  %602 = vmatpush.msra.mxu2 %v2429_v7 }
  0xb2   :  { %493 = vmatpush.msra.mxu0 %v1398_v12 }
  0xb3   :  { %583 = vmatpush.msra.mxu1 %v1388_v10  ;;  %603 = vmatpush.msra.mxu2 %v1393_v11 }
  0xb4   :  { %494 = vmatpush.msra.mxu0 %v1419_v16 }
  0xb5   :  { %584 = vmatpush.msra.mxu1 %v1409_v14  ;;  %604 = vmatpush.msra.mxu2 %v1414_v15 }
  0xb6   :  { %495 = vmatpush.msra.mxu0 %v1449_v22 }
  0xb7   :  { %585 = vmatpush.msra.mxu1 %v1439_v20  ;;  %605 = vmatpush.msra.mxu2 %v1444_v21 }
  0xb8   :  { %496 = vmatpush.msra.mxu0 %v1473_v26 }
  0xb9   :  { %586 = vmatpush.msra.mxu1 %v1463_v24  ;;  %606 = vmatpush.msra.mxu2 %v1468_v25 }
  0xba   :  { %497 = vmatpush.msra.mxu0 %v1508_v35 }
  0xbb   :  { %587 = vmatpush.msra.mxu1 %v1498_v33  ;;  %607 = vmatpush.msra.mxu2 %v1503_v34 }
  0xbc   :  { %498 = vmatpush.msra.mxu0 %v1527_v38 }
  0xbd   :  { %588 = vmatpush.msra.mxu1 %v1517_v36  ;;  %608 = vmatpush.msra.mxu2 %v1522_v37 }
  0xbe   :  { %499 = vmatpush.msra.mxu0 %v1554_v46 }
  0xbf   :  { %589 = vmatpush.msra.mxu1 %v1544_v44  ;;  %609 = vmatpush.msra.mxu2 %v1549_v45 }
  0xc0   :  { %500 = vmatpush.msra.mxu0 %v1573_v51 }
  0xc1   :  { %590 = vmatpush.msra.mxu1 %v1563_v49  ;;  %610 = vmatpush.msra.mxu2 %v1568_v50 }
  0xc2   :  { %501 = vmatpush.msra.mxu0 %v1595_v56 }
  0xc3   :  { %591 = vmatpush.msra.mxu1 %v1582_v54  ;;  %611 = vmatpush.msra.mxu2 %v1587_v55 }
  0xc4   :  { %502 = vmatpush.msra.mxu0 %v1611_v59 }
  0xc5   :  { %592 = vmatpush.msra.mxu1 %v1600_v57  ;;  %612 = vmatpush.msra.mxu2 %v1605_v58 }
  0xc6   :  { %503 = vmatpush.msra.mxu0 %v1632_v63 }
  0xc7   :  { %593 = vmatpush.msra.mxu1 %v1619_v61  ;;  %613 = vmatpush.msra.mxu2 %v1627_v62 }
  0xc8   :  { %504 = vmatpush.msra.mxu0 %v1650_v30 }
  0xc9   :  { %594 = vmatpush.msra.mxu1 %v1638_v1  ;;  %614 = vmatpush.msra.mxu2 %v1643_v28 }
  0xca   :  { %505 = vmatpush.msra.mxu0 %v1669_v42 }
  0xcb   :  { %595 = vmatpush.msra.mxu1 %v1656_v39  ;;  %615 = vmatpush.msra.mxu2 %v1661_v41 }
  0xcc   :  { %506 = vmatpush.msra.mxu0 %v1688_v0  ;;  %v2435_v0 = vld [vmem:[#allocation7_spill] sm:$0xff] }
  0xcd   :  { %596 = vmatpush.msra.mxu1 %v1675_v47  ;;  %616 = vmatpush.msra.mxu2 %v1680_v48  ;;  %v131_v39 = vadd.f32 %v128_v43, %v2435_v0 }
  0xff   :  { %v135_v17 = vpop.permute.xlu1 %134 }
 0x100   :  { %v137_v23 = vmul.f32 %v135_v17, %v2432_v52  ;;  %v138_v2 = vmul.f32 %v135_v17, %v2433_v29 }
 0x102   :  { %v140_v42 = vadd.f32 %v137_v23, %v130_v60  ;;  %v141_v47 = vadd.f32 %v138_v2, %v131_v39  ;;  %v1129_v39 = vld [vmem:[%s2344_s0 + $0x10] sm:$0xff]  ;;  %v2437_v23 = vmov 1   ;;  %v139_v60 = vmul.f32 %v135_v17, %v1720_v32 }
 0x103   :  { %302 = vperm.xlu2 %1153, %v1129_v39   ;;  %1157 = vset.pattern.permute.xlu1 %v2437_v23 }
 0x10b   :  { %1154 = vset.pattern.permute.xlu2 %v2437_v23 }
 0x10c   :  { %312 = vperm.xlu2 %1154, %v1129_v39  }
 0x114   :  { %442 = vperm.xlu2 %1154, %v1132_v53   ;;  %v2445_v53 = vld [vmem:[#allocation15_spill] sm:$0xff] }
 0x12a   :  { %v208_v28 = vpop.f32.mrf.mxu0  ;;  %v228_v41 = vpop.f32.mrf.mxu1 }
 0x12b   :  { %v251_v1 = vadd.f32 %v208_v28, %v140_v42  ;;  %v271_v48 = vadd.f32 %v228_v41, %v141_v47 }
 0x12d   :  { %v1127_v30 = vmul.f32 -1.442695, %v251_v1  ;;  %v1128_v62 = vmul.f32 -1.442695, %v271_v48 }
 0x12f   :  { %1174 = vpow2.f32 %v1127_v30 }
 0x130   :  { %1176 = vpow2.f32 %v1128_v62  ;;  %v2436_v62 = vld [vmem:[#allocation24_spill] sm:$0xff] }
 0x131   :  { %v129_v41 = vmul.f32 %v125_v40, %v2436_v62  ;;  %v248_v43 = vpop.f32.mrf.mxu2 }
 0x133   :  { %v132_v2 = vadd.f32 %v129_v41, %v1725_v9 }
 0x135   :  { %v1175_v19 = vpop.eup %1174  ;;  %v142_v29 = vadd.f32 %v139_v60, %v132_v2  ;;  %v2449_v2 = vld [vmem:[#allocation19_spill] sm:$0xff] }
 0x136   :  { %v1177_v4 = vpop.eup %1176  ;;  %v255_v61 = vadd.f32 1.0, %v1175_v19  ;;  %v2450_v60 = vld [vmem:[#allocation23_spill] sm:$0xff] }
 0x137   :  { %v275_v52 = vadd.f32 1.0, %v1177_v4 }
 0x138   :  { %1178 = vrcp.f32 %v255_v61  ;;  %v267_v48 = vand.u32 2147483648, %v255_v61  ;;  %v265_v4 = vand.u32 2147483647, %v255_v61  ;;  %vm261_vm9 = vweird.f32 %v255_v61 }
 0x139   :  { %1180 = vrcp.f32 %v275_v52  ;;  %v287_v17 = vand.u32 2147483648, %v275_v52  ;;  %vm281_vm13 = vweird.f32 %v275_v52 }
 0x13a   :  { %v268_v40 = vor.u32 1.1754944e-38, %v267_v48  ;;  %vm266_vm11 = vcmp.eq.f32.partialorder %v265_v4, 8.507059e+37  ;;  %v2447_v4 = vld [vmem:[#allocation20_spill] sm:$0xff] }
 0x13b   :  { %v288_v48 = vor.u32 1.1754944e-38, %v287_v17 }
 0x13e   :  { %v1179_v1 = vpop.eup %1178 }
 0x13f   :  { %v1181_v28 = vpop.eup %1180  ;;  %v257_v30 = vmul.f32 %v1179_v1, %v255_v61  ;;  %vm262_vm8 = vweird.f32 %v1179_v1  ;;  %v285_v61 = vand.u32 2147483647, %v275_v52 }
 0x140   :  { %v277_v47 = vmul.f32 %v1181_v28, %v275_v52  ;;  %vm263_vm10 = vmor %vm261_vm9, %vm262_vm8  ;;  %vm282_vm12 = vweird.f32 %v1181_v28  ;;  %v2443_v52 = vld [vmem:[#allocation13_spill] sm:$0xff] }
 0x141   :  { %v258_v42 = vsub.f32 1.0, %v257_v30  ;;  %vm283_vm14 = vmor %vm281_vm13, %vm282_vm12  ;;  %vm286_vm15 = vcmp.eq.f32.partialorder %v285_v61, 8.507059e+37 }
 0x142   :  { %v278_v0 = vsub.f32 1.0, %v277_v47 }
 0x143   :  { %v259_v19 = vmul.f32 %v1179_v1, %v258_v42  ;;  %v291_v42 = vadd.f32 %v1738_v18, %v248_v43  ;;  %v2448_v43 = vld [vmem:[#allocation18_spill] sm:$0xff] }
 0x144   :  { %v279_v58 = vmul.f32 %v1181_v28, %v278_v0 }
 0x145   :  { %v260_v13 = vadd.f32 %v1179_v1, %v259_v19  ;;  %v2438_v19 = vmov 0  }
 0x146   :  { %v280_v41 = vadd.f32 %v1181_v28, %v279_v58  ;;  %1158 = vset.pattern.permute.xlu2 %v2438_v19  ;;  %v2440_v58 = vld [vmem:[#allocation11_spill] sm:$0xff] }
 0x147   :  { %v264_v30 = vsel %vm263_vm10, %v1179_v1, %v260_v13 }
 0x148   :  { %v269_v62 = vsel %vm266_vm11, %v268_v40, %v264_v30  ;;  %v284_v39 = vsel %vm283_vm14, %v1181_v28, %v280_v41  ;;  %v2446_v28 = vld [vmem:[#allocation16_spill] sm:$0xff]  ;;  %v2451_v40 = vld [vmem:[#allocation21_spill] sm:$0xff]  ;;  %v2452_v30 = vld [vmem:[#allocation22_spill] sm:$0xff] }
 0x149   :  { %v292_v63 = vmul.f32 %v291_v42, %v269_v62  ;;  %v289_v1 = vsel %vm286_vm15, %v288_v48, %v284_v39  ;;  %v2453_v41 = vld [vmem:[#allocation5_spill] sm:$0xff]  ;;  %v2455_v48 = vld [vmem:[#allocation7_spill] sm:$0xff] }
 0x14a   :  { %v2454_v39 = vld [vmem:[#allocation9_spill] sm:$0xff] }
 0x14b   :  { %v293_v57 = vadd.f32 %v292_v63, %v142_v29  ;;  %v2441_v63 = vld [vmem:[#allocation14_spill] sm:$0xff]  ;;  %v2444_v29 = vld [vmem:[#allocation17_spill] sm:$0xff] }
 0x14d   :  { %1182 = vtanh.f32 %v293_v57  ;;  %v2439_v57 = vld [vmem:[#allocation10_spill] sm:$0xff] }
 0x153   :  { %v1183_v47 = vpop.eup %1182 }
 0x154   :  { %v295_v13 = vsub.f32 %v1785_v31, %v1183_v47  ;;  %v2442_v31 = vld [vmem:[#allocation12_spill] sm:$0xff] }
 0x156   :  { %v296_v62 = vmul.f32 %v295_v13, %v289_v1  ;;  %v2456_v1 = vld [vmem:[#allocation4_spill] sm:$0xff] }
 0x158   :  { %v1870_v0 = vadd.f32 %v1183_v47, %v296_v62 }
 0x15a   :  { %337 = vmatmul.f32.vlgmr.msra.gmra.mxu3 %v1870_v0  ;;  %357 = vmatmul.f32.vlgmr.msrb.gmra.mxu0 %v1870_v0 }
 0x15b   :  { %377 = vmatmul.f32.vlgmr.msrb.gmra.mxu1 %v1870_v0  ;;  %621 = vmatpush.msra.mxu3 %v1356_v5 }
 0x15c   :  { %711 = vmatpush.msrb.mxu0 %v1346_v3  ;;  %731 = vmatpush.msrb.mxu1 %v2428_v27 }
 0x15d   :  { %622 = vmatpush.msra.mxu3 %v1374_v8  ;;  %v303_v42 = vpop.permute.xlu2 %302 }
 0x15e   :  { %712 = vmatpush.msrb.mxu0 %v1364_v6  ;;  %732 = vmatpush.msrb.mxu1 %v2429_v7  ;;  %v306_v17 = vmul.f32 %v303_v42, %v2453_v41  ;;  %v305_v62 = vmul.f32 %v303_v42, %v2456_v1 }
 0x15f   :  { %623 = vmatpush.msra.mxu3 %v1398_v12 }
 0x160   :  { %713 = vmatpush.msrb.mxu0 %v1388_v10  ;;  %733 = vmatpush.msrb.mxu1 %v1393_v11  ;;  %v309_v13 = vadd.f32 %v306_v17, %v2455_v48 }
 0x161   :  { %624 = vmatpush.msra.mxu3 %v1419_v16 }
 0x162   :  { %714 = vmatpush.msrb.mxu0 %v1409_v14  ;;  %734 = vmatpush.msrb.mxu1 %v1414_v15 }
 0x163   :  { %625 = vmatpush.msra.mxu3 %v1449_v22 }
 0x164   :  { %715 = vmatpush.msrb.mxu0 %v1439_v20  ;;  %735 = vmatpush.msrb.mxu1 %v1444_v21 }
 0x165   :  { %626 = vmatpush.msra.mxu3 %v1473_v26 }
 0x166   :  { %716 = vmatpush.msrb.mxu0 %v1463_v24  ;;  %736 = vmatpush.msrb.mxu1 %v1468_v25  ;;  %v313_v61 = vpop.permute.xlu2 %312 }
 0x167   :  { %627 = vmatpush.msra.mxu3 %v1508_v35  ;;  %v316_v47 = vmul.f32 %v313_v61, %v2454_v39 }
 0x168   :  { %717 = vmatpush.msrb.mxu0 %v1498_v33  ;;  %737 = vmatpush.msrb.mxu1 %v1503_v34 }
 0x169   :  { %628 = vmatpush.msra.mxu3 %v1527_v38  ;;  %v319_v19 = vadd.f32 %v316_v47, %v309_v13 }
 0x16a   :  { %718 = vmatpush.msrb.mxu0 %v1517_v36  ;;  %738 = vmatpush.msrb.mxu1 %v1522_v37 }
 0x16b   :  { %629 = vmatpush.msra.mxu3 %v1554_v46 }
 0x16c   :  { %719 = vmatpush.msrb.mxu0 %v1544_v44  ;;  %739 = vmatpush.msrb.mxu1 %v1549_v45 }
 0x16d   :  { %630 = vmatpush.msra.mxu3 %v1573_v51 }
 0x16e   :  { %720 = vmatpush.msrb.mxu0 %v1563_v49  ;;  %740 = vmatpush.msrb.mxu1 %v1568_v50 }
 0x16f   :  { %631 = vmatpush.msra.mxu3 %v1595_v56 }
 0x170   :  { %721 = vmatpush.msrb.mxu0 %v1582_v54  ;;  %741 = vmatpush.msrb.mxu1 %v1587_v55 }
 0x171   :  { %632 = vmatpush.msra.mxu3 %v1611_v59 }
 0x172   :  { %722 = vmatpush.msrb.mxu0 %v2439_v57  ;;  %742 = vmatpush.msrb.mxu1 %v2440_v58 }
 0x173   :  { %633 = vmatpush.msra.mxu3 %v2441_v63 }
 0x174   :  { %723 = vmatpush.msrb.mxu0 %v2442_v31  ;;  %743 = vmatpush.msrb.mxu1 %v2443_v52 }
 0x175   :  { %634 = vmatpush.msra.mxu3 %v2444_v29 }
 0x176   :  { %724 = vmatpush.msrb.mxu0 %v2445_v53  ;;  %744 = vmatpush.msrb.mxu1 %v2446_v28 }
 0x177   :  { %635 = vmatpush.msra.mxu3 %v2447_v4 }
 0x178   :  { %725 = vmatpush.msrb.mxu0 %v2448_v43  ;;  %745 = vmatpush.msrb.mxu1 %v2449_v2  ;;  %v2457_v43 = vld [vmem:[#allocation8_spill] sm:$0xff] }
 0x179   :  { %636 = vmatpush.msra.mxu3 %v2450_v60  ;;  %v315_v2 = vmul.f32 %v313_v61, %v2457_v43  ;;  %v2458_v60 = vld [vmem:[#allocation6_spill] sm:$0xff]  ;;  %v2459_v43 = vld [vmem:[#allocation24_spill] sm:$0xff] }
 0x17a   :  { %726 = vmatpush.msrb.mxu0 %v2451_v40  ;;  %746 = vmatpush.msrb.mxu1 %v2452_v30  ;;  %v308_v28 = vadd.f32 %v305_v62, %v2458_v60 }
 0x17c   :  { %v318_v53 = vadd.f32 %v315_v2, %v308_v28 }
 0x1d7   :  { %v358_v23 = vpop.f32.mrf.mxu0 }
 0x1d8   :  { %v401_v4 = vadd.f32 %v358_v23, %v319_v19  ;;  %v307_v23 = vmul.f32 %v303_v42, %v2459_v43  ;;  %v378_v2 = vpop.f32.mrf.mxu1 }
 0x1da   :  { %v1131_v40 = vmul.f32 -1.442695, %v401_v4 }
 0x1dc   :  { %1184 = vpow2.f32 %v1131_v40  ;;  %v317_v40 = vmul.f32 %v313_v61, %v1720_v32 }
 0x1dd   :  { %v338_v30 = vpop.f32.mrf.mxu3 }
 0x1de   :  { %v381_v29 = vadd.f32 %v338_v30, %v318_v53 }
 0x1e0   :  { %v1130_v41 = vmul.f32 -1.442695, %v381_v29  ;;  %v310_v29 = vadd.f32 %v307_v23, %v1725_v9 }
 0x1e2   :  { %1186 = vpow2.f32 %v1130_v41  ;;  %v1185_v52 = vpop.eup %1184 }
 0x1e3   :  { %v405_v31 = vadd.f32 1.0, %v1185_v52 }
 0x1e5   :  { %v417_v23 = vand.u32 2147483648, %v405_v31  ;;  %vm411_vm5 = vweird.f32 %v405_v31  ;;  %v415_v61 = vand.u32 2147483647, %v405_v31 }
 0x1e7   :  { %vm416_vm7 = vcmp.eq.f32.partialorder %v415_v61, 8.507059e+37 }
 0x1e8   :  { %v1187_v39 = vpop.eup %1186 }
 0x1e9   :  { %v385_v17 = vadd.f32 1.0, %v1187_v39  ;;  %v421_v39 = vadd.f32 %v1738_v18, %v378_v2 }
 0x1eb   :  { %1188 = vrcp.f32 %v385_v17  ;;  %v397_v4 = vand.u32 2147483648, %v385_v17  ;;  %v395_v53 = vand.u32 2147483647, %v385_v17  ;;  %vm391_vm1 = vweird.f32 %v385_v17 }
 0x1ec   :  { %1190 = vrcp.f32 %v405_v31 }
 0x1ed   :  { %v398_v41 = vor.u32 1.1754944e-38, %v397_v4  ;;  %vm396_vm3 = vcmp.eq.f32.partialorder %v395_v53, 8.507059e+37 }
 0x1f1   :  { %v1189_v47 = vpop.eup %1188 }
 0x1f2   :  { %v1191_v13 = vpop.eup %1190  ;;  %v387_v48 = vmul.f32 %v1189_v47, %v385_v17  ;;  %vm392_vm0 = vweird.f32 %v1189_v47 }
 0x1f3   :  { %v407_v62 = vmul.f32 %v1191_v13, %v405_v31  ;;  %vm393_vm2 = vmor %vm391_vm1, %vm392_vm0  ;;  %vm412_vm4 = vweird.f32 %v1191_v13 }
 0x1f4   :  { %v388_v19 = vsub.f32 1.0, %v387_v48  ;;  %v320_v48 = vadd.f32 %v317_v40, %v310_v29  ;;  %vm413_vm6 = vmor %vm411_vm5, %vm412_vm4  ;;  %v2479_v40 = vld [vmem:[#allocation24_spill] sm:$0xff] }
 0x1f5   :  { %v408_v30 = vsub.f32 1.0, %v407_v62 }
 0x1f6   :  { %v389_v28 = vmul.f32 %v1189_v47, %v388_v19 }
 0x1f7   :  { %v409_v19 = vmul.f32 %v1191_v13, %v408_v30 }
 0x1f8   :  { %v390_v52 = vadd.f32 %v1189_v47, %v389_v28  ;;  %v418_v28 = vor.u32 1.1754944e-38, %v417_v23  ;;  %v2480_v23 = vmov 0  }
 0x1f9   :  { %v410_v63 = vadd.f32 %v1191_v13, %v409_v19 }
 0x1fa   :  { %v394_v60 = vsel %vm393_vm2, %v1189_v47, %v390_v52 }
 0x1fb   :  { %v399_v42 = vsel %vm396_vm3, %v398_v41, %v394_v60  ;;  %v414_v17 = vsel %vm413_vm6, %v1191_v13, %v410_v63 }
 0x1fc   :  { %v422_v43 = vmul.f32 %v421_v39, %v399_v42  ;;  %v419_v47 = vsel %vm416_vm7, %v418_v28, %v414_v17 }
 0x1fe   :  { %v423_v1 = vadd.f32 %v422_v43, %v320_v48 }
 0x200   :  { %1192 = vtanh.f32 %v423_v1  ;;  %v1138_v1 = vld [vmem:[%s2344_s0 + $0x28] sm:$0xff] }
 0x201   :  { %692 = vperm.xlu2 %1158, %v1138_v1  }
 0x206   :  { %v1193_v62 = vpop.eup %1192 }
 0x207   :  { %v425_v4 = vsub.f32 %v1870_v0, %v1193_v62 }
 0x209   :  { %v426_v53 = vmul.f32 %v425_v4, %v419_v47 }
 0x20b   :  { %v1934_v60 = vadd.f32 %v1193_v62, %v426_v53 }
 0x20d   :  { %467 = vmatmul.f32.vlgmr.msrb.gmra.mxu2 %v1934_v60  ;;  %487 = vmatmul.f32.vlgmr.msrb.gmra.mxu3 %v1934_v60 }
 0x20e   :  { %507 = vmatmul.f32.vlgmr.msra.gmra.mxu0 %v1934_v60  ;;  %751 = vmatpush.msrb.mxu2 %v1356_v5  ;;  %v2461_v5 = vld [vmem:[#allocation12_spill] sm:$0xff] }
 0x20f   :  { %841 = vmatpush.msrb.mxu3 %v1346_v3  ;;  %861 = vmatpush.msra.mxu0 %v2428_v27  ;;  %v2460_v3 = vld [vmem:[#allocation14_spill] sm:$0xff] }
 0x210   :  { %752 = vmatpush.msrb.mxu2 %v1374_v8  ;;  %v2463_v8 = vld [vmem:[#allocation17_spill] sm:$0xff] }
 0x211   :  { %842 = vmatpush.msrb.mxu3 %v1364_v6  ;;  %862 = vmatpush.msra.mxu0 %v2429_v7  ;;  %v2462_v6 = vld [vmem:[#allocation13_spill] sm:$0xff] }
 0x212   :  { %753 = vmatpush.msrb.mxu2 %v1398_v12  ;;  %v2466_v12 = vld [vmem:[#allocation20_spill] sm:$0xff] }
 0x213   :  { %843 = vmatpush.msrb.mxu3 %v1388_v10  ;;  %863 = vmatpush.msra.mxu0 %v1393_v11  ;;  %v2464_v10 = vld [vmem:[#allocation15_spill] sm:$0xff]  ;;  %v2465_v11 = vld [vmem:[#allocation16_spill] sm:$0xff] }
 0x214   :  { %754 = vmatpush.msrb.mxu2 %v1419_v16  ;;  %v2469_v16 = vld [vmem:[#allocation23_spill] sm:$0xff] }
 0x215   :  { %844 = vmatpush.msrb.mxu3 %v1409_v14  ;;  %864 = vmatpush.msra.mxu0 %v1414_v15  ;;  %v2467_v14 = vld [vmem:[#allocation18_spill] sm:$0xff]  ;;  %v2468_v15 = vld [vmem:[#allocation19_spill] sm:$0xff] }
 0x216   :  { %755 = vmatpush.msrb.mxu2 %v1449_v22  ;;  %v433_v22 = vpop.permute.xlu1 %432 }
 0x217   :  { %845 = vmatpush.msrb.mxu3 %v1439_v20  ;;  %865 = vmatpush.msra.mxu0 %v1444_v21  ;;  %v2470_v20 = vld [vmem:[#allocation21_spill] sm:$0xff]  ;;  %v2471_v21 = vld [vmem:[#allocation22_spill] sm:$0xff]  ;;  %v437_v52 = vmul.f32 %v433_v22, %v2479_v40 }
 0x218   :  { %756 = vmatpush.msrb.mxu2 %v1473_v26  ;;  %v2473_v26 = vld [vmem:[#allocation5_spill] sm:$0xff] }
 0x219   :  { %846 = vmatpush.msrb.mxu3 %v1463_v24  ;;  %866 = vmatpush.msra.mxu0 %v1468_v25  ;;  %v2472_v24 = vld [vmem:[#allocation4_spill] sm:$0xff]  ;;  %v440_v61 = vadd.f32 %v437_v52, %v1725_v9  ;;  %v2110_v52 = vld [vmem:[%s2346_s3 + $0xb8] sm:$0xff] }
 0x21a   :  { %757 = vmatpush.msrb.mxu2 %v1508_v35  ;;  %v435_v25 = vmul.f32 %v433_v22, %v2472_v24  ;;  %v2474_v35 = vld [vmem:[#allocation8_spill] sm:$0xff] }
 0x21b   :  { %847 = vmatpush.msrb.mxu3 %v1498_v33  ;;  %867 = vmatpush.msra.mxu0 %v1503_v34  ;;  %v436_v33 = vmul.f32 %v433_v22, %v2473_v26  ;;  %v443_v34 = vpop.permute.xlu2 %442 }
 0x21c   :  { %758 = vmatpush.msrb.mxu2 %v1527_v38  ;;  %v447_v17 = vmul.f32 %v443_v34, %v1720_v32 }
 0x21d   :  { %848 = vmatpush.msrb.mxu3 %v1517_v36  ;;  %868 = vmatpush.msra.mxu0 %v1522_v37  ;;  %v445_v36 = vmul.f32 %v443_v34, %v2474_v35  ;;  %v2475_v37 = vld [vmem:[#allocation9_spill] sm:$0xff] }
 0x21e   :  { %759 = vmatpush.msrb.mxu2 %v1554_v46  ;;  %v446_v38 = vmul.f32 %v443_v34, %v2475_v37  ;;  %v2477_v46 = vld [vmem:[#allocation7_spill] sm:$0xff]  ;;  %v1246_v34 = vld [vmem:[%s2346_s3 + $0x170] sm:$0xff] }
 0x21f   :  { %849 = vmatpush.msrb.mxu3 %v1544_v44  ;;  %869 = vmatpush.msra.mxu0 %v1549_v45  ;;  %v2476_v44 = vld [vmem:[#allocation6_spill] sm:$0xff] }
 0x220   :  { %760 = vmatpush.msrb.mxu2 %v1573_v51  ;;  %v438_v45 = vadd.f32 %v435_v25, %v2476_v44 }
 0x221   :  { %850 = vmatpush.msrb.mxu3 %v1563_v49  ;;  %870 = vmatpush.msra.mxu0 %v1568_v50  ;;  %v439_v49 = vadd.f32 %v436_v33, %v2477_v46  ;;  %v1135_v50 = vld [vmem:[%s2344_s0 + $0x20] sm:$0xff]  ;;  %v2014_v33 = vld [vmem:[%s2346_s3 + $0x178] sm:$0xff] }
 0x222   :  { %761 = vmatpush.msrb.mxu2 %v1595_v56  ;;  %572 = vperm.xlu1 %1157, %v1135_v50   ;;  %v448_v51 = vadd.f32 %v445_v36, %v438_v45  ;;  %v2026_v36 = vld [vmem:[%s2346_s3 + $0x160] sm:$0xff]  ;;  %v1249_v45 = vld [vmem:[%s2346_s3 + $0x158] sm:$0xff] }
 0x223   :  { %851 = vmatpush.msrb.mxu3 %v1582_v54  ;;  %871 = vmatpush.msra.mxu0 %v1587_v55  ;;  %v449_v54 = vadd.f32 %v446_v38, %v439_v49  ;;  %v1248_v38 = vld [vmem:[%s2346_s3 + $0x150] sm:$0xff]  ;;  %v2038_v49 = vld [vmem:[%s2346_s3 + $0x148] sm:$0xff] }
 0x224   :  { %762 = vmatpush.msrb.mxu2 %v1611_v59  ;;  %562 = vperm.xlu0 %1156, %v1135_v50   ;;  %v1251_v50 = vld [vmem:[%s2346_s3 + $0x138] sm:$0xff] }
 0x225   :  { %852 = vmatpush.msrb.mxu3 %v2439_v57  ;;  %872 = vmatpush.msra.mxu0 %v2440_v58  ;;  %v2478_v57 = vmov 1  }
 0x226   :  { %763 = vmatpush.msrb.mxu2 %v2460_v3 }
 0x227   :  { %853 = vmatpush.msrb.mxu3 %v2461_v5  ;;  %873 = vmatpush.msra.mxu0 %v2462_v6  ;;  %v450_v5 = vadd.f32 %v447_v17, %v440_v61  ;;  %v1276_v61 = vld [vmem:[%s2346_s3 + $0x80] sm:$0xff]  ;;  %v2146_v17 = vld [vmem:[%s2346_s3 + $0x70] sm:$0xff] }
 0x228   :  { %764 = vmatpush.msrb.mxu2 %v2463_v8 }
 0x229   :  { %854 = vmatpush.msrb.mxu3 %v2464_v10  ;;  %874 = vmatpush.msra.mxu0 %v2465_v11 }
 0x22a   :  { %765 = vmatpush.msrb.mxu2 %v2466_v12  ;;  %702 = vperm.xlu1 %1157, %v1138_v1   ;;  %v1264_v1 = vld [vmem:[%s2346_s3 + $0xe0] sm:$0xff] }
 0x22b   :  { %855 = vmatpush.msrb.mxu3 %v2467_v14  ;;  %875 = vmatpush.msra.mxu0 %v2468_v15 }
 0x22c   :  { %766 = vmatpush.msrb.mxu2 %v2469_v16  ;;  %1159 = vset.pattern.permute.xlu0 %v2478_v57 }
 0x22d   :  { %856 = vmatpush.msrb.mxu3 %v2470_v20  ;;  %876 = vmatpush.msra.mxu0 %v2471_v21 }
 0x232   :  { %1160 = vset.pattern.permute.xlu1 %v2480_v23  ;;  %v1275_v23 = vld [vmem:[%s2346_s3 + $0x78] sm:$0xff] }
 0x28b   :  { %v508_v19 = vpop.f32.mrf.mxu0 }
 0x28c   :  { %v551_v47 = vadd.f32 %v1738_v18, %v508_v19  ;;  %v2134_v19 = vld [vmem:[%s2346_s3 + $0x88] sm:$0xff] }
 0x290   :  { %v468_v55 = vpop.f32.mrf.mxu2  ;;  %v488_v56 = vpop.f32.mrf.mxu3 }
 0x291   :  { %v511_v59 = vadd.f32 %v468_v55, %v448_v51  ;;  %v531_v27 = vadd.f32 %v488_v56, %v449_v54  ;;  %v1252_v51 = vld [vmem:[%s2346_s3 + $0x140] sm:$0xff]  ;;  %v2050_v54 = vld [vmem:[%s2346_s3 + $0x130] sm:$0xff]  ;;  %v1255_v56 = vld [vmem:[%s2346_s3 + $0x128] sm:$0xff] }
 0x292   :  { %v1254_v55 = vld [vmem:[%s2346_s3 + $0x120] sm:$0xff] }
 0x293   :  { %v1133_v7 = vmul.f32 -1.442695, %v511_v59  ;;  %v1134_v0 = vmul.f32 -1.442695, %v531_v27  ;;  %v2062_v59 = vld [vmem:[%s2346_s3 + $0x118] sm:$0xff]  ;;  %v1257_v27 = vld [vmem:[%s2346_s3 + $0x108] sm:$0xff] }
 0x295   :  { %1194 = vpow2.f32 %v1133_v7  ;;  %v1258_v7 = vld [vmem:[%s2346_s3 + $0x110] sm:$0xff] }
 0x296   :  { %1196 = vpow2.f32 %v1134_v0  ;;  %v2074_v0 = vld [vmem:[%s2346_s3 + $0x100] sm:$0xff] }
 0x29b   :  { %v1195_v58 = vpop.eup %1194 }
 0x29c   :  { %v1197_v63 = vpop.eup %1196  ;;  %v515_v31 = vadd.f32 1.0, %v1195_v58  ;;  %v1260_v58 = vld [vmem:[%s2346_s3 + $0xf0] sm:$0xff] }
 0x29d   :  { %v535_v43 = vadd.f32 1.0, %v1197_v63  ;;  %v1261_v63 = vld [vmem:[%s2346_s3 + $0xf8] sm:$0xff] }
 0x29e   :  { %1198 = vrcp.f32 %v515_v31  ;;  %v527_v41 = vand.u32 2147483648, %v515_v31  ;;  %v525_v48 = vand.u32 2147483647, %v515_v31  ;;  %vm521_vm9 = vweird.f32 %v515_v31 }
 0x29f   :  { %1200 = vrcp.f32 %v535_v43  ;;  %v547_v12 = vand.u32 2147483648, %v535_v43  ;;  %vm541_vm13 = vweird.f32 %v535_v43  ;;  %v545_v14 = vand.u32 2147483647, %v535_v43 }
 0x2a0   :  { %v528_v28 = vor.u32 1.1754944e-38, %v527_v41  ;;  %vm526_vm11 = vcmp.eq.f32.partialorder %v525_v48, 8.507059e+37  ;;  %v1270_v41 = vld [vmem:[%s2346_s3 + $0xb0] sm:$0xff]  ;;  %v1273_v48 = vld [vmem:[%s2346_s3 + $0x98] sm:$0xff] }
 0x2a1   :  { %v548_v20 = vor.u32 1.1754944e-38, %v547_v12  ;;  %vm546_vm15 = vcmp.eq.f32.partialorder %v545_v14, 8.507059e+37  ;;  %v2194_v12 = vld [vmem:[%s2346_s3 + $0x10] sm:$0xff]  ;;  %v1290_v14 = vld [vmem:[%s2346_s3] sm:$0xff] }
 0x2a4   :  { %v1199_v13 = vpop.eup %1198 }
 0x2a5   :  { %v1201_v2 = vpop.eup %1200  ;;  %v517_v29 = vmul.f32 %v1199_v13, %v515_v31  ;;  %vm522_vm8 = vweird.f32 %v1199_v13  ;;  %v2086_v31 = vld [vmem:[%s2346_s3 + $0xe8] sm:$0xff] }
 0x2a6   :  { %v537_v39 = vmul.f32 %v1201_v2, %v535_v43  ;;  %vm523_vm10 = vmor %vm521_vm9, %vm522_vm8  ;;  %vm542_vm12 = vweird.f32 %v1201_v2  ;;  %v1263_v43 = vld [vmem:[%s2346_s3 + $0xd8] sm:$0xff] }
 0x2a7   :  { %v518_v30 = vsub.f32 1.0, %v517_v29  ;;  %vm543_vm14 = vmor %vm541_vm13, %vm542_vm12  ;;  %v1267_v29 = vld [vmem:[%s2346_s3 + $0xc8] sm:$0xff] }
 0x2a8   :  { %v538_v4 = vsub.f32 1.0, %v537_v39  ;;  %v2122_v39 = vld [vmem:[%s2346_s3 + $0xa0] sm:$0xff] }
 0x2a9   :  { %v519_v42 = vmul.f32 %v1199_v13, %v518_v30  ;;  %v1269_v30 = vld [vmem:[%s2346_s3 + $0xa8] sm:$0xff] }
 0x2aa   :  { %v539_v8 = vmul.f32 %v1201_v2, %v538_v4  ;;  %v2158_v4 = vld [vmem:[%s2346_s3 + $0x58] sm:$0xff] }
 0x2ab   :  { %v520_v62 = vadd.f32 %v1199_v13, %v519_v42  ;;  %v1272_v42 = vld [vmem:[%s2346_s3 + $0x90] sm:$0xff] }
 0x2ac   :  { %v540_v11 = vadd.f32 %v1201_v2, %v539_v8  ;;  %v2182_v8 = vld [vmem:[%s2346_s3 + $0x28] sm:$0xff] }
 0x2ad   :  { %v524_v53 = vsel %vm523_vm10, %v1199_v13, %v520_v62  ;;  %v2098_v13 = vld [vmem:[%s2346_s3 + $0xd0] sm:$0xff]  ;;  %v1278_v62 = vld [vmem:[%s2346_s3 + $0x60] sm:$0xff] }
 0x2ae   :  { %v529_v3 = vsel %vm526_vm11, %v528_v28, %v524_v53  ;;  %v544_v15 = vsel %vm543_vm14, %v1201_v2, %v540_v11  ;;  %v1266_v2 = vld [vmem:[%s2346_s3 + $0xc0] sm:$0xff]  ;;  %v1279_v28 = vld [vmem:[%s2346_s3 + $0x68] sm:$0xff]  ;;  %v1282_v53 = vld [vmem:[%s2346_s3 + $0x50] sm:$0xff] }
 0x2af   :  { %v552_v6 = vmul.f32 %v551_v47, %v529_v3  ;;  %v549_v21 = vsel %vm546_vm15, %v548_v20, %v544_v15  ;;  %v1281_v47 = vld [vmem:[%s2346_s3 + $0x48] sm:$0xff]  ;;  %v2170_v3 = vld [vmem:[%s2346_s3 + $0x40] sm:$0xff] }
 0x2b0   :  { %v1288_v11 = vld [vmem:[%s2346_s3 + $0x20] sm:$0xff]  ;;  %v1291_v15 = vld [vmem:[%s2346_s3 + $0x8] sm:$0xff] }
 0x2b1   :  { %v553_v10 = vadd.f32 %v552_v6, %v450_v5  ;;  %v1284_v5 = vld [vmem:[%s2346_s3 + $0x30] sm:$0xff]  ;;  %v1285_v6 = vld [vmem:[%s2346_s3 + $0x38] sm:$0xff] }
 0x2b3   :  { %1202 = vtanh.f32 %v553_v10  ;;  %v1287_v10 = vld [vmem:[%s2346_s3 + $0x18] sm:$0xff] }
 0x2b9   :  { %v1203_v16 = vpop.eup %1202 }
 0x2ba   :  { %v555_v18 = vsub.f32 %v1934_v60, %v1203_v16  ;;  %v1245_v60 = vld [vmem:[%s2346_s3 + $0x168] sm:$0xff] }
 0x2bc   :  { %v556_v22 = vmul.f32 %v555_v18, %v549_v21  ;;  %v573_v18 = vpop.permute.xlu1 %572 }
 0x2bd   :  { %v575_v21 = vmul.f32 %v573_v18, %v2474_v35 }
 0x2be   :  { %v2006_v25 = vadd.f32 %v1203_v16, %v556_v22  ;;  %v563_v16 = vpop.permute.xlu0 %562 }
 0x2bf   :  { %v565_v20 = vmul.f32 %v563_v16, %v2472_v24 }
 0x2c0   :  { %597 = vmatmul.f32.vlgmr.msra.gmra.mxu1 %v2006_v25  ;;  %617 = vmatmul.f32.vlgmr.msra.gmra.mxu2 %v2006_v25 }
 0x2c1   :  { %637 = vmatmul.f32.vlgmr.msra.gmra.mxu3 %v2006_v25  ;;  %881 = vmatpush.msra.mxu1 %v2014_v33  ;;  %v568_v22 = vadd.f32 %v565_v20, %v2476_v44 }
 0x2c2   :  { %971 = vmatpush.msra.mxu2 %v1245_v60  ;;  %991 = vmatpush.msra.mxu3 %v1246_v34  ;;  %v566_v60 = vmul.f32 %v563_v16, %v2473_v26 }
 0x2c3   :  { %882 = vmatpush.msra.mxu1 %v2026_v36  ;;  %v578_v34 = vadd.f32 %v575_v21, %v568_v22 }
 0x2c4   :  { %972 = vmatpush.msra.mxu2 %v1248_v38  ;;  %992 = vmatpush.msra.mxu3 %v1249_v45  ;;  %v576_v45 = vmul.f32 %v573_v18, %v2475_v37 }
 0x2c5   :  { %883 = vmatpush.msra.mxu1 %v2038_v49 }
 0x2c6   :  { %973 = vmatpush.msra.mxu2 %v1251_v50  ;;  %993 = vmatpush.msra.mxu3 %v1252_v51  ;;  %v569_v51 = vadd.f32 %v566_v60, %v2477_v46 }
 0x2c7   :  { %884 = vmatpush.msra.mxu1 %v2050_v54 }
 0x2c8   :  { %974 = vmatpush.msra.mxu2 %v1254_v55  ;;  %994 = vmatpush.msra.mxu3 %v1255_v56  ;;  %v579_v56 = vadd.f32 %v576_v45, %v569_v51 }
 0x2c9   :  { %885 = vmatpush.msra.mxu1 %v2062_v59 }
 0x2ca   :  { %975 = vmatpush.msra.mxu2 %v1257_v27  ;;  %995 = vmatpush.msra.mxu3 %v1258_v7 }
 0x2cb   :  { %886 = vmatpush.msra.mxu1 %v2074_v0 }
 0x2cc   :  { %976 = vmatpush.msra.mxu2 %v1260_v58  ;;  %996 = vmatpush.msra.mxu3 %v1261_v63 }
 0x2cd   :  { %887 = vmatpush.msra.mxu1 %v2086_v31 }
 0x2ce   :  { %977 = vmatpush.msra.mxu2 %v1263_v43  ;;  %997 = vmatpush.msra.mxu3 %v1264_v1 }
 0x2cf   :  { %888 = vmatpush.msra.mxu1 %v2098_v13 }
 0x2d0   :  { %978 = vmatpush.msra.mxu2 %v1266_v2  ;;  %998 = vmatpush.msra.mxu3 %v1267_v29  ;;  %v1141_v2 = vld [vmem:[%s2344_s0 + $0x30] sm:$0xff] }
 0x2d1   :  { %889 = vmatpush.msra.mxu1 %v2110_v52  ;;  %832 = vperm.xlu0 %1159, %v1141_v2  }
 0x2d2   :  { %979 = vmatpush.msra.mxu2 %v1269_v30  ;;  %999 = vmatpush.msra.mxu3 %v1270_v41 }
 0x2d3   :  { %890 = vmatpush.msra.mxu1 %v2122_v39  ;;  %822 = vperm.xlu2 %1158, %v1141_v2  }
 0x2d4   :  { %980 = vmatpush.msra.mxu2 %v1272_v42  ;;  %1000 = vmatpush.msra.mxu3 %v1273_v48  ;;  %v567_v42 = vmul.f32 %v563_v16, %v2479_v40  ;;  %v2219_v16 = vld [vmem:[%s2345_s4] ss:$0 sm:$0xff] }
 0x2d5   :  { %891 = vmatpush.msra.mxu1 %v2134_v19 }
 0x2d6   :  { %981 = vmatpush.msra.mxu2 %v1275_v23  ;;  %1001 = vmatpush.msra.mxu3 %v1276_v61 }
 0x2d7   :  { %892 = vmatpush.msra.mxu1 %v2146_v17 }
 0x2d8   :  { %982 = vmatpush.msra.mxu2 %v1278_v62  ;;  %1002 = vmatpush.msra.mxu3 %v1279_v28 }
 0x2d9   :  { %893 = vmatpush.msra.mxu1 %v2158_v4 }
 0x2da   :  { %983 = vmatpush.msra.mxu2 %v1281_v47  ;;  %1003 = vmatpush.msra.mxu3 %v1282_v53  ;;  %v577_v47 = vmul.f32 %v573_v18, %v1720_v32 }
 0x2db   :  { %894 = vmatpush.msra.mxu1 %v2170_v3  ;;  %1161 = vset.pattern.permute.xlu2 %v2478_v57 }
 0x2dc   :  { %984 = vmatpush.msra.mxu2 %v1284_v5  ;;  %1004 = vmatpush.msra.mxu3 %v1285_v6  ;;  %v570_v5 = vadd.f32 %v567_v42, %v1725_v9 }
 0x2dd   :  { %895 = vmatpush.msra.mxu1 %v2182_v8 }
 0x2de   :  { %985 = vmatpush.msra.mxu2 %v1287_v10  ;;  %1005 = vmatpush.msra.mxu3 %v1288_v11  ;;  %v580_v21 = vadd.f32 %v577_v47, %v570_v5 }
 0x2df   :  { %896 = vmatpush.msra.mxu1 %v2194_v12 }
 0x2e0   :  { %986 = vmatpush.msra.mxu2 %v1290_v14  ;;  %1006 = vmatpush.msra.mxu3 %v1291_v15 }
 0x33d   :  { %v598_v38 = vpop.f32.mrf.mxu1 }
 0x33e   :  { %v641_v50 = vadd.f32 %v598_v38, %v578_v34 }
 0x340   :  { %v1136_v55 = vmul.f32 -1.442695, %v641_v50 }
 0x342   :  { %1204 = vpow2.f32 %v1136_v55 }
 0x343   :  { %v618_v27 = vpop.f32.mrf.mxu2 }
 0x344   :  { %v661_v7 = vadd.f32 %v618_v27, %v579_v56  ;;  %v638_v53 = vpop.f32.mrf.mxu3 }
 0x345   :  { %v681_v20 = vadd.f32 %v2219_v16, %v638_v53 }
 0x346   :  { %v1137_v58 = vmul.f32 -1.442695, %v661_v7 }
 0x348   :  { %v1205_v63 = vpop.eup %1204  ;;  %1206 = vpow2.f32 %v1137_v58 }
 0x349   :  { %v645_v43 = vadd.f32 1.0, %v1205_v63 }
 0x34b   :  { %1208 = vrcp.f32 %v645_v43  ;;  %v657_v23 = vand.u32 2147483648, %v645_v43  ;;  %v655_v62 = vand.u32 2147483647, %v645_v43  ;;  %vm651_vm1 = vweird.f32 %v645_v43 }
 0x34d   :  { %v658_v11 = vor.u32 1.1754944e-38, %v657_v23  ;;  %vm656_vm3 = vcmp.eq.f32.partialorder %v655_v62, 8.507059e+37 }
 0x34e   :  { %v1207_v1 = vpop.eup %1206 }
 0x34f   :  { %v665_v29 = vadd.f32 1.0, %v1207_v1 }
 0x351   :  { %v1209_v30 = vpop.eup %1208  ;;  %1210 = vrcp.f32 %v665_v29  ;;  %v677_v38 = vand.u32 2147483648, %v665_v29  ;;  %vm671_vm5 = vweird.f32 %v665_v29  ;;  %v675_v45 = vand.u32 2147483647, %v665_v29 }
 0x352   :  { %v647_v41 = vmul.f32 %v1209_v30, %v645_v43  ;;  %vm652_vm0 = vweird.f32 %v1209_v30 }
 0x353   :  { %vm653_vm2 = vmor %vm651_vm1, %vm652_vm0  ;;  %v678_v55 = vor.u32 1.1754944e-38, %v677_v38  ;;  %vm676_vm7 = vcmp.eq.f32.partialorder %v675_v45, 8.507059e+37 }
 0x354   :  { %v648_v48 = vsub.f32 1.0, %v647_v41 }
 0x356   :  { %v649_v61 = vmul.f32 %v1209_v30, %v648_v48 }
 0x357   :  { %v1211_v28 = vpop.eup %1210 }
 0x358   :  { %v667_v6 = vmul.f32 %v1211_v28, %v665_v29  ;;  %v650_v10 = vadd.f32 %v1209_v30, %v649_v61  ;;  %vm672_vm4 = vweird.f32 %v1211_v28 }
 0x359   :  { %vm673_vm6 = vmor %vm671_vm5, %vm672_vm4 }
 0x35a   :  { %v668_v14 = vsub.f32 1.0, %v667_v6  ;;  %v654_v15 = vsel %vm653_vm2, %v1209_v30, %v650_v10 }
 0x35b   :  { %v659_v18 = vsel %vm656_vm3, %v658_v11, %v654_v15 }
 0x35c   :  { %v682_v57 = vmul.f32 %v681_v20, %v659_v18  ;;  %v669_v22 = vmul.f32 %v1211_v28, %v668_v14 }
 0x35e   :  { %v683_v60 = vadd.f32 %v682_v57, %v580_v21  ;;  %v670_v34 = vadd.f32 %v1211_v28, %v669_v22 }
 0x360   :  { %1212 = vtanh.f32 %v683_v60  ;;  %v674_v50 = vsel %vm673_vm6, %v1211_v28, %v670_v34 }
 0x361   :  { %v679_v27 = vsel %vm676_vm7, %v678_v55, %v674_v50 }
 0x366   :  { %v1213_v51 = vpop.eup %1212 }
 0x367   :  { %v685_v56 = vsub.f32 %v2006_v25, %v1213_v51  ;;  %v693_v25 = vpop.permute.xlu2 %692 }
 0x368   :  { %v697_v41 = vmul.f32 %v693_v25, %v2479_v40 }
 0x369   :  { %v686_v7 = vmul.f32 %v685_v56, %v679_v27 }
 0x36a   :  { %v700_v47 = vadd.f32 %v697_v41, %v1725_v9 }
 0x36b   :  { %v2223_v58 = vadd.f32 %v1213_v51, %v686_v7 }
 0x36d   :  { %727 = vmatmul.f32.vlgmr.msrb.gmra.mxu0 %v2223_v58  ;;  %747 = vmatmul.f32.vlgmr.msrb.gmra.mxu1 %v2223_v58 }
 0x36e   :  { %767 = vmatmul.f32.vlgmr.msrb.gmra.mxu2 %v2223_v58  ;;  %1011 = vmatpush.msrb.mxu0 %v2014_v33  ;;  %v695_v33 = vmul.f32 %v693_v25, %v2472_v24 }
 0x36f   :  { %v823_v7 = vpop.permute.xlu2 %822 }
 0x370   :  { %1012 = vmatpush.msrb.mxu0 %v2026_v36  ;;  %v696_v36 = vmul.f32 %v693_v25, %v2473_v26  ;;  %v826_v25 = vmul.f32 %v823_v7, %v2473_v26 }
 0x372   :  { %1013 = vmatpush.msrb.mxu0 %v2038_v49  ;;  %v703_v49 = vpop.permute.xlu1 %702 }
 0x373   :  { %v707_v53 = vmul.f32 %v703_v49, %v1720_v32 }
 0x374   :  { %1014 = vmatpush.msrb.mxu0 %v2050_v54  ;;  %v705_v54 = vmul.f32 %v703_v49, %v2474_v35 }
 0x375   :  { %v710_v20 = vadd.f32 %v707_v53, %v700_v47 }
 0x376   :  { %1015 = vmatpush.msrb.mxu0 %v2062_v59  ;;  %v706_v59 = vmul.f32 %v703_v49, %v2475_v37  ;;  %v829_v49 = vadd.f32 %v826_v25, %v2477_v46 }
 0x378   :  { %1016 = vmatpush.msrb.mxu0 %v2074_v0  ;;  %v698_v0 = vadd.f32 %v695_v33, %v2476_v44  ;;  %v833_v33 = vpop.permute.xlu0 %832 }
 0x379   :  { %v837_v47 = vmul.f32 %v833_v33, %v1720_v32 }
 0x37a   :  { %1017 = vmatpush.msrb.mxu0 %v2086_v31  ;;  %v699_v31 = vadd.f32 %v696_v36, %v2477_v46  ;;  %v836_v36 = vmul.f32 %v833_v33, %v2475_v37 }
 0x37c   :  { %1018 = vmatpush.msrb.mxu0 %v2098_v13  ;;  %v708_v13 = vadd.f32 %v705_v54, %v698_v0  ;;  %v839_v54 = vadd.f32 %v836_v36, %v829_v49  ;;  %v835_v0 = vmul.f32 %v833_v33, %v2474_v35  ;;  %v1091_v49 = vld [vmem:[%s2350_s5 + $0x68] sm:$0xff] }
 0x37e   :  { %1019 = vmatpush.msrb.mxu0 %v2110_v52  ;;  %v709_v52 = vadd.f32 %v706_v59, %v699_v31 }
 0x380   :  { %1020 = vmatpush.msrb.mxu0 %v2122_v39 }
 0x382   :  { %1021 = vmatpush.msrb.mxu0 %v2134_v19 }
 0x384   :  { %1022 = vmatpush.msrb.mxu0 %v2146_v17 }
 0x386   :  { %1023 = vmatpush.msrb.mxu0 %v2158_v4 }
 0x388   :  { %1024 = vmatpush.msrb.mxu0 %v2170_v3 }
 0x38a   :  { %1025 = vmatpush.msrb.mxu0 %v2182_v8 }
 0x38c   :  { %1026 = vmatpush.msrb.mxu0 %v2194_v12 }
 0x3ea   :  { %v728_v39 = vpop.f32.mrf.mxu0  ;;  %v748_v19 = vpop.f32.mrf.mxu1 }
 0x3eb   :  { %v771_v17 = vadd.f32 %v728_v39, %v708_v13  ;;  %v791_v4 = vadd.f32 %v748_v19, %v709_v52 }
 0x3ed   :  { %v1139_v3 = vmul.f32 -1.442695, %v771_v17  ;;  %v1140_v8 = vmul.f32 -1.442695, %v791_v4 }
 0x3ef   :  { %1214 = vpow2.f32 %v1139_v3 }
 0x3f0   :  { %1216 = vpow2.f32 %v1140_v8 }
 0x3f1   :  { %v768_v28 = vpop.f32.mrf.mxu2 }
 0x3f2   :  { %v811_v14 = vadd.f32 %v2219_v16, %v768_v28 }
 0x3f5   :  { %v1215_v12 = vpop.eup %1214 }
 0x3f6   :  { %v1217_v63 = vpop.eup %1216  ;;  %v775_v43 = vadd.f32 1.0, %v1215_v12 }
 0x3f7   :  { %v795_v1 = vadd.f32 1.0, %v1217_v63 }
 0x3f8   :  { %1218 = vrcp.f32 %v775_v43  ;;  %v787_v23 = vand.u32 2147483648, %v775_v43  ;;  %v785_v62 = vand.u32 2147483647, %v775_v43  ;;  %vm781_vm9 = vweird.f32 %v775_v43 }
 0x3f9   :  { %1220 = vrcp.f32 %v795_v1  ;;  %v807_v60 = vand.u32 2147483648, %v795_v1  ;;  %vm801_vm13 = vweird.f32 %v795_v1  ;;  %v805_v34 = vand.u32 2147483647, %v795_v1 }
 0x3fa   :  { %v788_v10 = vor.u32 1.1754944e-38, %v787_v23  ;;  %vm786_vm11 = vcmp.eq.f32.partialorder %v785_v62, 8.507059e+37 }
 0x3fb   :  { %v808_v50 = vor.u32 1.1754944e-38, %v807_v60  ;;  %vm806_vm15 = vcmp.eq.f32.partialorder %v805_v34, 8.507059e+37 }
 0x3fe   :  { %v1219_v2 = vpop.eup %1218 }
 0x3ff   :  { %v1221_v29 = vpop.eup %1220  ;;  %v777_v30 = vmul.f32 %v1219_v2, %v775_v43  ;;  %vm782_vm8 = vweird.f32 %v1219_v2  ;;  %v1144_v43 = vld [vmem:[%s2344_s0 + $0x38] sm:$0xff] }
 0x400   :  { %v797_v48 = vmul.f32 %v1221_v29, %v795_v1  ;;  %vm783_vm10 = vmor %vm781_vm9, %vm782_vm8  ;;  %vm802_vm12 = vweird.f32 %v1221_v29  ;;  %952 = vperm.xlu1 %1160, %v1144_v43   ;;  %962 = vperm.xlu2 %1161, %v1144_v43   ;;  %v1082_v43 = vld [vmem:[%s2350_s5 + $0x20] sm:$0xff] }
 0x401   :  { %v778_v42 = vsub.f32 1.0, %v777_v30  ;;  %vm803_vm14 = vmor %vm801_vm13, %vm802_vm12  ;;  %v827_v30 = vmul.f32 %v823_v7, %v2479_v40 }
 0x402   :  { %v798_v6 = vsub.f32 1.0, %v797_v48 }
 0x403   :  { %v779_v61 = vmul.f32 %v1219_v2, %v778_v42  ;;  %v830_v28 = vadd.f32 %v827_v30, %v1725_v9  ;;  %v1079_v30 = vld [vmem:[%s2350_s5 + $0x8] sm:$0xff] }
 0x404   :  { %v799_v21 = vmul.f32 %v1221_v29, %v798_v6 }
 0x405   :  { %v780_v5 = vadd.f32 %v1219_v2, %v779_v61 }
 0x406   :  { %v800_v22 = vadd.f32 %v1221_v29, %v799_v21 }
 0x407   :  { %v784_v11 = vsel %vm783_vm10, %v1219_v2, %v780_v5 }
 0x408   :  { %v789_v15 = vsel %vm786_vm11, %v788_v10, %v784_v11  ;;  %v804_v38 = vsel %vm803_vm14, %v1221_v29, %v800_v22 }
 0x409   :  { %v812_v18 = vmul.f32 %v811_v14, %v789_v15  ;;  %v809_v55 = vsel %vm806_vm15, %v808_v50, %v804_v38  ;;  %v840_v15 = vadd.f32 %v837_v47, %v830_v28 }
 0x40b   :  { %v813_v57 = vadd.f32 %v812_v18, %v710_v20 }
 0x40d   :  { %1222 = vtanh.f32 %v813_v57 }
 0x413   :  { %v1223_v45 = vpop.eup %1222 }
 0x414   :  { %v815_v51 = vsub.f32 %v2223_v58, %v1223_v45  ;;  %v825_v58 = vmul.f32 %v823_v7, %v2472_v24  ;;  %v1093_v7 = vld [vmem:[%s2350_s5 + $0x78] sm:$0xff] }
 0x415   :  { %1098 = vmatpush.msrb.mxu1 %v1093_v7 }
 0x416   :  { %v816_v56 = vmul.f32 %v815_v51, %v809_v55  ;;  %v828_v13 = vadd.f32 %v825_v58, %v2476_v44 }
 0x418   :  { %v2255_v27 = vadd.f32 %v1223_v45, %v816_v56  ;;  %v838_v39 = vadd.f32 %v835_v0, %v828_v13  ;;  %v1088_v13 = vld [vmem:[%s2350_s5 + $0x50] sm:$0xff] }
 0x41a   :  { %857 = vmatmul.f32.vlgmr.msrb.gmra.mxu3 %v2255_v27  ;;  %877 = vmatmul.f32.vlgmr.msra.gmra.mxu0 %v2255_v27 }
 0x41b   :  { %897 = vmatmul.f32.vlgmr.msra.gmra.mxu1 %v2255_v27 }
 0x45a   :  { %v963_v58 = vpop.permute.xlu2 %962 }
 0x472   :  { %v953_v25 = vpop.permute.xlu1 %952 }
 0x473   :  { %v955_v33 = vmul.f32 %v953_v25, %v2472_v24  ;;  %v956_v36 = vmul.f32 %v953_v25, %v2473_v26  ;;  %v966_v24 = vmul.f32 %v963_v58, %v2475_v37  ;;  %v1089_v26 = vld [vmem:[%s2350_s5 + $0x58] sm:$0xff]  ;;  %v957_v47 = vmul.f32 %v953_v25, %v2479_v40 }
 0x474   :  { %v1085_v37 = vld [vmem:[%s2350_s5 + $0x38] sm:$0xff] }
 0x475   :  { %v959_v0 = vadd.f32 %v956_v36, %v2477_v46 }
 0x497   :  { %v878_v59 = vpop.f32.mrf.mxu0 }
 0x498   :  { %v921_v31 = vadd.f32 %v878_v59, %v839_v54  ;;  %v898_v62 = vpop.f32.mrf.mxu1  ;;  %v1090_v54 = vld [vmem:[%s2350_s5 + $0x60] sm:$0xff]  ;;  %v958_v59 = vadd.f32 %v955_v33, %v2476_v44  ;;  %v1087_v44 = vld [vmem:[%s2350_s5 + $0x48] sm:$0xff] }
 0x499   :  { %v941_v10 = vadd.f32 %v2219_v16, %v898_v62 }
 0x49a   :  { %v1143_v52 = vmul.f32 -1.442695, %v921_v31  ;;  %v965_v31 = vmul.f32 %v963_v58, %v2474_v35  ;;  %v1086_v35 = vld [vmem:[%s2350_s5 + $0x40] sm:$0xff] }
 0x49c   :  { %1224 = vpow2.f32 %v1143_v52  ;;  %v968_v52 = vadd.f32 %v965_v31, %v958_v59 }
 0x49d   :  { %v858_v19 = vpop.f32.mrf.mxu3 }
 0x49e   :  { %v901_v17 = vadd.f32 %v858_v19, %v838_v39  ;;  %v969_v39 = vadd.f32 %v966_v24, %v959_v0 }
 0x4a0   :  { %v1142_v4 = vmul.f32 -1.442695, %v901_v17 }
 0x4a2   :  { %1226 = vpow2.f32 %v1142_v4  ;;  %v1225_v3 = vpop.eup %1224 }
 0x4a3   :  { %v925_v12 = vadd.f32 1.0, %v1225_v3  ;;  %v1084_v3 = vld [vmem:[%s2350_s5 + $0x30] sm:$0xff] }
 0x4a5   :  { %v937_v22 = vand.u32 2147483648, %v925_v12  ;;  %vm931_vm5 = vweird.f32 %v925_v12  ;;  %v935_v60 = vand.u32 2147483647, %v925_v12 }
 0x4a7   :  { %v938_v45 = vor.u32 1.1754944e-38, %v937_v22  ;;  %vm936_vm7 = vcmp.eq.f32.partialorder %v935_v60, 8.507059e+37 }
 0x4a8   :  { %v1227_v8 = vpop.eup %1226 }
 0x4a9   :  { %v905_v63 = vadd.f32 1.0, %v1227_v8 }
 0x4ab   :  { %1228 = vrcp.f32 %v905_v63  ;;  %v917_v48 = vand.u32 2147483648, %v905_v63  ;;  %v915_v61 = vand.u32 2147483647, %v905_v63  ;;  %vm911_vm1 = vweird.f32 %v905_v63 }
 0x4ac   :  { %1230 = vrcp.f32 %v925_v12 }
 0x4ad   :  { %v918_v6 = vor.u32 1.1754944e-38, %v917_v48  ;;  %vm916_vm3 = vcmp.eq.f32.partialorder %v915_v61, 8.507059e+37 }
 0x4b1   :  { %v1229_v1 = vpop.eup %1228 }
 0x4b2   :  { %v1231_v2 = vpop.eup %1230  ;;  %v907_v29 = vmul.f32 %v1229_v1, %v905_v63  ;;  %vm912_vm0 = vweird.f32 %v1229_v1  ;;  %v1083_v63 = vld [vmem:[%s2350_s5 + $0x28] sm:$0xff] }
 0x4b3   :  { %v927_v42 = vmul.f32 %v1231_v2, %v925_v12  ;;  %vm913_vm2 = vmor %vm911_vm1, %vm912_vm0  ;;  %vm932_vm4 = vweird.f32 %v1231_v2 }
 0x4b4   :  { %v908_v41 = vsub.f32 1.0, %v907_v29  ;;  %vm933_vm6 = vmor %vm931_vm5, %vm932_vm4 }
 0x4b5   :  { %v928_v5 = vsub.f32 1.0, %v927_v42 }
 0x4b6   :  { %v909_v23 = vmul.f32 %v1229_v1, %v908_v41 }
 0x4b7   :  { %v929_v18 = vmul.f32 %v1231_v2, %v928_v5 }
 0x4b8   :  { %v910_v53 = vadd.f32 %v1229_v1, %v909_v23  ;;  %v1078_v23 = vld [vmem:[%s2350_s5] sm:$0xff] }
 0x4b9   :  { %v930_v57 = vadd.f32 %v1231_v2, %v929_v18 }
 0x4ba   :  { %v914_v11 = vsel %vm913_vm2, %v1229_v1, %v910_v53  ;;  %v1081_v1 = vld [vmem:[%s2350_s5 + $0x18] sm:$0xff] }
 0x4bb   :  { %v919_v14 = vsel %vm916_vm3, %v918_v6, %v914_v11  ;;  %v934_v34 = vsel %vm933_vm6, %v1231_v2, %v930_v57  ;;  %v1080_v2 = vld [vmem:[%s2350_s5 + $0x10] sm:$0xff] }
 0x4bc   :  { %v942_v20 = vmul.f32 %v941_v10, %v919_v14  ;;  %v939_v51 = vsel %vm936_vm7, %v938_v45, %v934_v34 }
 0x4be   :  { %v943_v21 = vadd.f32 %v942_v20, %v840_v15  ;;  %v960_v15 = vadd.f32 %v957_v47, %v1725_v9  ;;  %v967_v20 = vmul.f32 %v963_v58, %v1720_v32 }
 0x4c0   :  { %1232 = vtanh.f32 %v943_v21  ;;  %v970_v34 = vadd.f32 %v967_v20, %v960_v15 }
 0x4c6   :  { %v1233_v38 = vpop.eup %1232 }
 0x4c7   :  { %v945_v50 = vsub.f32 %v2255_v27, %v1233_v38  ;;  %v1092_v27 = vld [vmem:[%s2350_s5 + $0x70] sm:$0xff] }
 0x4c8   :  { %1099 = vmatpush.msrb.mxu1 %v1092_v27 }
 0x4c9   :  { %v946_v55 = vmul.f32 %v945_v50, %v939_v51 }
 0x4ca   :  { %1100 = vmatpush.msrb.mxu1 %v1091_v49  ;;  %v1163_v49 = vld [vmem:[%s2349_s6] ss:$0 sm:$0xff] }
 0x4cb   :  { %v2274_v56 = vadd.f32 %v1233_v38, %v946_v55 }
 0x4cc   :  { %1101 = vmatpush.msrb.mxu1 %v1090_v54 }
 0x4cd   :  { %987 = vmatmul.f32.vlgmr.msra.gmra.mxu2 %v2274_v56  ;;  %1007 = vmatmul.f32.vlgmr.msra.gmra.mxu3 %v2274_v56 }
 0x4ce   :  { %1027 = vmatmul.f32.vlgmr.msrb.gmra.mxu0 %v2274_v56  ;;  %1102 = vmatpush.msrb.mxu1 %v1089_v26 }
 0x4d0   :  { %1103 = vmatpush.msrb.mxu1 %v1088_v13 }
 0x4d2   :  { %1104 = vmatpush.msrb.mxu1 %v1087_v44 }
 0x4d4   :  { %1105 = vmatpush.msrb.mxu1 %v1086_v35 }
 0x4d6   :  { %1106 = vmatpush.msrb.mxu1 %v1085_v37 }
 0x4d8   :  { %1107 = vmatpush.msrb.mxu1 %v1084_v3 }
 0x4da   :  { %1108 = vmatpush.msrb.mxu1 %v1083_v63 }
 0x4dc   :  { %1109 = vmatpush.msrb.mxu1 %v1082_v43 }
 0x4de   :  { %1110 = vmatpush.msrb.mxu1 %v1081_v1 }
 0x4e0   :  { %1111 = vmatpush.msrb.mxu1 %v1080_v2 }
 0x4e2   :  { %1112 = vmatpush.msrb.mxu1 %v1079_v30 }
 0x4e4   :  { %1113 = vmatpush.msrb.mxu1 %v1078_v23 }
 0x54b   :  { %v1028_v14 = vpop.f32.mrf.mxu0 }
 0x54c   :  { %v1071_v22 = vadd.f32 %v2219_v16, %v1028_v14 }
 0x550   :  { %v988_v46 = vpop.f32.mrf.mxu2  ;;  %v1008_v19 = vpop.f32.mrf.mxu3 }
 0x551   :  { %v1031_v17 = vadd.f32 %v988_v46, %v968_v52  ;;  %v1051_v4 = vadd.f32 %v1008_v19, %v969_v39 }
 0x553   :  { %v1145_v8 = vmul.f32 -1.442695, %v1031_v17  ;;  %v1146_v12 = vmul.f32 -1.442695, %v1051_v4 }
 0x555   :  { %1234 = vpow2.f32 %v1145_v8 }
 0x556   :  { %1236 = vpow2.f32 %v1146_v12 }
 0x55b   :  { %v1235_v29 = vpop.eup %1234 }
 0x55c   :  { %v1237_v41 = vpop.eup %1236  ;;  %v1035_v42 = vadd.f32 1.0, %v1235_v29 }
 0x55d   :  { %v1055_v48 = vadd.f32 1.0, %v1237_v41 }
 0x55e   :  { %1238 = vrcp.f32 %v1035_v42  ;;  %v1047_v5 = vand.u32 2147483648, %v1035_v42  ;;  %v1045_v11 = vand.u32 2147483647, %v1035_v42  ;;  %vm1041_vm9 = vweird.f32 %v1035_v42 }
 0x55f   :  { %1240 = vrcp.f32 %v1055_v48  ;;  %v1067_v9 = vand.u32 2147483648, %v1055_v48  ;;  %vm1061_vm13 = vweird.f32 %v1055_v48  ;;  %v1065_v32 = vand.u32 2147483647, %v1055_v48 }
 0x560   :  { %v1048_v21 = vor.u32 1.1754944e-38, %v1047_v5  ;;  %vm1046_vm11 = vcmp.eq.f32.partialorder %v1045_v11, 8.507059e+37 }
 0x561   :  { %v1068_v25 = vor.u32 1.1754944e-38, %v1067_v9  ;;  %vm1066_vm15 = vcmp.eq.f32.partialorder %v1065_v32, 8.507059e+37 }
 0x564   :  { %v1239_v61 = vpop.eup %1238 }
 0x565   :  { %v1241_v62 = vpop.eup %1240  ;;  %v1037_v28 = vmul.f32 %v1239_v61, %v1035_v42  ;;  %vm1042_vm8 = vweird.f32 %v1239_v61 }
 0x566   :  { %v1057_v6 = vmul.f32 %v1241_v62, %v1055_v48  ;;  %vm1043_vm10 = vmor %vm1041_vm9, %vm1042_vm8  ;;  %vm1062_vm12 = vweird.f32 %v1241_v62 }
 0x567   :  { %v1038_v53 = vsub.f32 1.0, %v1037_v28  ;;  %vm1063_vm14 = vmor %vm1061_vm13, %vm1062_vm12 }
 0x568   :  { %v1058_v57 = vsub.f32 1.0, %v1057_v6 }
 0x569   :  { %v1039_v10 = vmul.f32 %v1239_v61, %v1038_v53 }
 0x56a   :  { %v1059_v45 = vmul.f32 %v1241_v62, %v1058_v57 }
 0x56b   :  { %v1040_v18 = vadd.f32 %v1239_v61, %v1039_v10 }
 0x56c   :  { %v1060_v51 = vadd.f32 %v1241_v62, %v1059_v45 }
 0x56d   :  { %v1044_v60 = vsel %vm1043_vm10, %v1239_v61, %v1040_v18 }
 0x56e   :  { %v1049_v40 = vsel %vm1046_vm11, %v1048_v21, %v1044_v60  ;;  %v1064_v55 = vsel %vm1063_vm14, %v1241_v62, %v1060_v51 }
 0x56f   :  { %v1072_v38 = vmul.f32 %v1071_v22, %v1049_v40  ;;  %v1069_v27 = vsel %vm1066_vm15, %v1068_v25, %v1064_v55 }
 0x571   :  { %v1073_v50 = vadd.f32 %v1072_v38, %v970_v34 }
 0x573   :  { %1242 = vtanh.f32 %v1073_v50 }
 0x579   :  { %v1243_v7 = vpop.eup %1242 }
 0x57a   :  { %v1075_v16 = vsub.f32 %v2274_v56, %v1243_v7 }
 0x57c   :  { %v1076_v33 = vmul.f32 %v1075_v16, %v1069_v27 }
 0x57e   :  { %v1077_v36 = vadd.f32 %v1243_v7, %v1076_v33 }
 0x580   :  { %1114 = vmatmul.f32.vlgmr.msrb.gmra.mxu1 %v1077_v36 }
 0x5fd   :  { %v1115_v58 = vpop.f32.mrf.mxu1 }
 0x5fe   :  { %v1116_v54 = vadd.f32 %v1163_v49, %v1115_v58 }
 0x600   :  { %1118 = vst [vmem:[%s2351_s7] sm:$0xff] %v1116_v54 }

</bundles_post_ra>
